<compile_context>
chip_gen: v6e
topology: v6e:2x2x1
jax: 0.10.0
libtpu: 0.0.40
codegen_flags: <defaults>
</compile_context>

<pallas_src>
import functools

import jax
import jax.numpy as jnp
from jax import lax
from jax.experimental import pallas as pl
from jax.experimental.pallas import tpu as pltpu  # noqa: F401  (TPU backend)


# ------------------------------ fused kernel --------------------------------

def _net_fused_kernel(
    x_ref, src_col_ref, dst_row_ref, eattr_ref, batch_col_ref, batch_row_ref,
    w_lin_ref, b_lin_ref, w_gat_ref, w_edge_ref,
    att_src_ref, att_dst_ref, att_edge_ref, b_gat_ref,
    w_score_ref, b_score_ref,
    w1_ref, b1_ref, w2_ref, b2_ref, w3_ref, b3_ref,
    out_ref,
    *, heads, nhid, ratio,
):
    f32 = jnp.float32
    N = x_ref.shape[0]
    E = src_col_ref.shape[0]
    G = out_ref.shape[0]
    H, C = heads, nhid

    dot = functools.partial(jnp.dot, preferred_element_type=jnp.float32)

    # Small shared constants (live in vregs).
    eye_nn = (lax.broadcasted_iota(jnp.int32, (N, N), 0)
              == lax.broadcasted_iota(jnp.int32, (N, N), 1)).astype(f32)
    ones_nn = jnp.ones((N, N), f32)
    ones_1n = jnp.ones((1, N), f32)

    def row_bcast(col):
        # col: [N,1] -> [N,N] with entry [i, j] = col[j]  (MXU trick, no transpose)
        return dot(ones_nn, eye_nn * col)

    # ---- 1) h = elu(lin(x)) -------------------------------------------------
    y = dot(x_ref[...], w_lin_ref[...]) + b_lin_ref[...]
    h = jnp.where(y > 0.0, y, jnp.exp(jnp.minimum(y, 0.0)) - 1.0)          # [N, nhid//2]

    # ---- 2) GATConv(h, edge_index, edge_attr), heads concatenated, + ReLU ---
    xp = dot(h, w_gat_ref[...])                                            # [N, H*C]

    # Dense edge structure built from the edge list (no XLA scatters).
    src_onehot = (lax.broadcasted_iota(jnp.int32, (E, N), 1)
                  == src_col_ref[...]).astype(f32)                         # [E, N]
    dst_onehot_t = (lax.broadcasted_iota(jnp.int32, (N, E), 0)
                    == dst_row_ref[...]).astype(f32)                       # [N, E]
    pres = dot(dst_onehot_t, src_onehot)                                   # [N, N]

    # Self-loop edge_attr = mean of incoming edge attrs (fill_value='mean').
    deg_in = jnp.sum(dst_onehot_t, axis=1, keepdims=True)                  # [N, 1]
    attr_sum = dot(dst_onehot_t, eattr_ref[...])                           # [N, edge_dim]
    loop_attr = attr_sum / jnp.maximum(deg_in, 1.0)

    ee = dot(eattr_ref[...], w_edge_ref[...])                              # [E, H*C]
    ee_loop = dot(loop_attr, w_edge_ref[...])                              # [N, H*C]

    att_src = att_src_ref[...]
    att_dst = att_dst_ref[...]
    att_edge = att_edge_ref[...]
    b_gat = b_gat_ref[...]
    present = pres + eye_nn                                                # edges + self-loops

    head_outs = []
    for hh in range(H):                                                    # static unroll, H=3
        lo, hi = hh * C, (hh + 1) * C
        xp_h = xp[:, lo:hi]                                                # [N, C]
        a_src = jnp.sum(xp_h * att_src[hh:hh + 1, :], axis=1, keepdims=True)       # [N,1]
        a_dst = jnp.sum(xp_h * att_dst[hh:hh + 1, :], axis=1, keepdims=True)       # [N,1]
        a_e = jnp.sum(ee[:, lo:hi] * att_edge[hh:hh + 1, :], axis=1, keepdims=True)       # [E,1]
        a_loop = jnp.sum(ee_loop[:, lo:hi] * att_edge[hh:hh + 1, :], axis=1, keepdims=True)  # [N,1]

        # logits[d, s] = a_dst[d] + a_src[s] + a_edge(edge s->d)   (self-loop on diag)
        z = (a_dst + row_bcast(a_src)
             + dot(dst_onehot_t, a_e * src_onehot)
             + eye_nn * a_loop)
        z = jnp.where(z > 0.0, z, 0.2 * z)                                 # leaky_relu(0.2)
        z = jnp.where(present > 0.0, z, -1e30)
        z = z - jnp.max(z, axis=1, keepdims=True)
        p = jnp.exp(z)
        p = p * pl.reciprocal(jnp.sum(p, axis=1, keepdims=True), approx=True)
        o_h = dot(p, xp_h) + b_gat[:, lo:hi]
        head_outs.append(jnp.maximum(o_h, 0.0))                            # fused F.relu
    x1 = jnp.concatenate(head_outs, axis=1)                                # [N, H*C]

    # ---- 3) SAGPool: GCN score + per-graph top-k (rank counting, no sort) ---
    adj = jnp.minimum(pres, 1.0) + eye_nn                                  # A + I
    dinv = lax.rsqrt(jnp.sum(adj, axis=1, keepdims=True))                  # [N, 1]
    a_hat = dinv * adj * row_bcast(dinv)
    xw = jnp.sum(x1 * w_score_ref[...], axis=1, keepdims=True)             # x1 @ W_score, [N,1]
    score = dot(a_hat, xw) + b_score_ref[...]                              # [N, 1]

    batch_col = batch_col_ref[...]                                         # [N,1] int32
    batch_row = batch_row_ref[...]                                         # [1,N] int32
    same_graph = batch_col == batch_row                                    # [N, N]
    score_row_b = row_bcast(score)                                         # [i,j] = score_j
    row_i = lax.broadcasted_iota(jnp.int32, (N, N), 0)
    col_i = lax.broadcasted_iota(jnp.int32, (N, N), 1)

    # beaten[i,j]: node j ranks above node i within the same graph (stable tie-break).
    beaten = jnp.logical_and(
        same_graph,
        jnp.logical_or(score_row_b > score,
                       jnp.logical_and(score_row_b == score, col_i < row_i))).astype(f32)
    rank_col = jnp.sum(beaten, axis=1, keepdims=True)                      # [N,1]

    memb = (lax.broadcasted_iota(jnp.int32, (G, N), 0) == batch_row).astype(f32)    # [G,N]
    memb_t = (lax.broadcasted_iota(jnp.int32, (N, G), 1) == batch_col).astype(f32)  # [N,G]
    n_per_graph = jnp.sum(memb, axis=1, keepdims=True)                     # [G,1]
    k_graph = jnp.ceil(ratio * n_per_graph)                                # [G,1]
    k_col = dot(memb_t, k_graph)                                           # [N,1]
    sel_col = (rank_col < k_col).astype(f32)                               # [N,1]
    sel_row = dot(ones_1n, eye_nn * sel_col)                               # [1,N] (same mask)
    # TODO(synk): post-pool edge_index/edge_attr filtering skipped (unused downstream)

    x_pool = x1 * jnp.tanh(score)                                          # [N, H*C]

    # ---- 4) readout = [global_max | global_mean] over pooled nodes ----------
    mp = memb * sel_row                                                    # [G, N]
    mp_t = memb_t * sel_col                                                # [N, G]
    cnt = jnp.sum(mp, axis=1, keepdims=True)                               # [G, 1]
    mean = dot(mp, x_pool) * pl.reciprocal(cnt, approx=True)               # [G, H*C]

    mx = jnp.zeros((G, H * C), f32)
    g_iota_col = lax.broadcasted_iota(jnp.int32, (G, 1), 0)
    for g in range(G):                                                     # static unroll, G tiny
        masked = jnp.where(mp_t[:, g:g + 1] > 0.0, x_pool, -1e30)          # 2-D, no [G,N,F]
        row = jnp.max(masked, axis=0, keepdims=True)                       # [1, H*C]
        mx = mx + (g_iota_col == g).astype(f32) * row
    readout = jnp.concatenate([mx, mean], axis=1)                          # [G, 2*H*C]

    # ---- 5) relu(lin1) -> relu(lin2) -> log_softmax(lin3) -------------------
    h1 = jnp.maximum(dot(readout, w1_ref[...]) + b1_ref[...], 0.0)
    # TODO(synk): dropout omitted (inference-mode semantics; torch RNG not reproducible)
    h2 = jnp.maximum(dot(h1, w2_ref[...]) + b2_ref[...], 0.0)
    zc = dot(h2, w3_ref[...]) + b3_ref[...]
    zc = zc - jnp.max(zc, axis=1, keepdims=True)
    out_ref[...] = zc - jnp.log(jnp.sum(jnp.exp(zc), axis=1, keepdims=True))


# ------------------------------ model wrapper --------------------------------

def init_params(key, num_features, nhid, num_classes, heads=3, edge_dim=2):
    ks = jax.random.split(key, 16)
    s = 0.1
    p = {
        "W_lin": jax.random.normal(ks[0], (num_features, nhid // 2)) * s,
        "b_lin": jax.random.normal(ks[1], (nhid // 2,)) * s,
        "W_gat": jax.random.normal(ks[2], (nhid // 2, heads * nhid)) * s,
        "W_edge": jax.random.normal(ks[3], (edge_dim, heads * nhid)) * s,
        "att_src": jax.random.normal(ks[4], (heads, nhid)) * s,
        "att_dst": jax.random.normal(ks[5], (heads, nhid)) * s,
        "att_edge": jax.random.normal(ks[6], (heads, nhid)) * s,
        "b_gat": jax.random.normal(ks[7], (heads * nhid,)) * s,
        "W_score": jax.random.normal(ks[8], (heads * nhid, 1)) * s,
        "b_score": jax.random.normal(ks[9], (1,)) * s,
        "W1": jax.random.normal(ks[10], (heads * nhid * 2, nhid)) * s,
        "b1": jax.random.normal(ks[11], (nhid,)) * s,
        "W2": jax.random.normal(ks[12], (nhid, nhid // 2)) * s,
        "b2": jax.random.normal(ks[13], (nhid // 2,)) * s,
        "W3": jax.random.normal(ks[14], (nhid // 2, num_classes)) * s,
        "b3": jax.random.normal(ks[15], (num_classes,)) * s,
    }
    return jax.tree_util.tree_map(lambda a: a.astype(jnp.float32), p)


@functools.partial(
    jax.jit,
    static_argnames=("num_graphs", "num_classes", "nhid", "pooling_ratio", "heads"))
def net_forward(p, x, edge_index, edge_attr, batch, *, num_graphs, num_classes,
                nhid, pooling_ratio, heads=3):
    N = x.shape[0]
    E = edge_index.shape[1]

    # Tiny layout plumbing only (reshapes/casts) — all heavy lifting is in one kernel.
    src_col = edge_index[0].reshape(E, 1).astype(jnp.int32)
    dst_row = edge_index[1].reshape(1, E).astype(jnp.int32)
    batch_col = batch.reshape(N, 1).astype(jnp.int32)
    batch_row = batch.reshape(1, N).astype(jnp.int32)

    call = pl.pallas_call(
        functools.partial(_net_fused_kernel, heads=heads, nhid=nhid,
                          ratio=float(pooling_ratio)),
        out_shape=jax.ShapeDtypeStruct((num_graphs, num_classes), jnp.float32),
    )
    return call(
        x.astype(jnp.float32), src_col, dst_row, edge_attr.astype(jnp.float32),
        batch_col, batch_row,
        p["W_lin"], p["b_lin"].reshape(1, -1), p["W_gat"], p["W_edge"],
        p["att_src"], p["att_dst"], p["att_edge"], p["b_gat"].reshape(1, -1),
        p["W_score"].reshape(1, -1), p["b_score"].reshape(1, 1),
        p["W1"], p["b1"].reshape(1, -1), p["W2"], p["b2"].reshape(1, -1),
        p["W3"], p["b3"].reshape(1, -1),
    )


# ----------------------------------- main ------------------------------------

if __name__ == "__main__":
    num_features, nhid, num_classes = 8, 32, 4
    pooling_ratio, heads = 0.5, 3

    key = jax.random.PRNGKey(0)
    k_param, k_x, k_e = jax.random.split(key, 3)
    params = init_params(k_param, num_features, nhid, num_classes, heads=heads, edge_dim=2)

    # two graphs of 6 nodes each; bidirectional ring edges within each graph
    graph_sizes = [6, 6]
    N = sum(graph_sizes)
    batch_list, src_list, dst_list = [], [], []
    off = 0
    for g, n_g in enumerate(graph_sizes):
        batch_list += [g] * n_g
        for i in range(n_g):
            a, b = off + i, off + (i + 1) % n_g
            src_list += [a, b]
            dst_list += [b, a]
        off += n_g
    batch = jnp.array(batch_list, dtype=jnp.int32)
    edge_index = jnp.array([src_list, dst_list], dtype=jnp.int32)
    E = edge_index.shape[1]

    x = jax.random.normal(k_x, (N, num_features), dtype=jnp.float32)
    edge_attr = jax.random.normal(k_e, (E, 2), dtype=jnp.float32)

    out = net_forward(params, x, edge_index, edge_attr, batch,
                      num_graphs=len(graph_sizes), num_classes=num_classes,
                      nhid=nhid, pooling_ratio=pooling_ratio, heads=heads)
    out = jax.block_until_ready(out)

    assert out.shape == (len(graph_sizes), num_classes)
    assert bool(jnp.all(jnp.isfinite(out)))
    assert bool(jnp.allclose(jnp.sum(jnp.exp(out), axis=-1), 1.0, atol=1e-4))
    print("KERNEL_OK")
</pallas_src>

<mosaic_0001>
module attributes {stable_mosaic.version = 11 : i64} {
  func.func @_net_fused_kernel(%arg0: memref<12x8xf32, #tpu.memory_space<vmem>>, %arg1: memref<24x1xi32, #tpu.memory_space<vmem>>, %arg2: memref<1x24xi32, #tpu.memory_space<vmem>>, %arg3: memref<24x2xf32, #tpu.memory_space<vmem>>, %arg4: memref<12x1xi32, #tpu.memory_space<vmem>>, %arg5: memref<1x12xi32, #tpu.memory_space<vmem>>, %arg6: memref<8x16xf32, #tpu.memory_space<vmem>>, %arg7: memref<1x16xf32, #tpu.memory_space<vmem>>, %arg8: memref<16x96xf32, #tpu.memory_space<vmem>>, %arg9: memref<2x96xf32, #tpu.memory_space<vmem>>, %arg10: memref<3x32xf32, #tpu.memory_space<vmem>>, %arg11: memref<3x32xf32, #tpu.memory_space<vmem>>, %arg12: memref<3x32xf32, #tpu.memory_space<vmem>>, %arg13: memref<1x96xf32, #tpu.memory_space<vmem>>, %arg14: memref<1x96xf32, #tpu.memory_space<vmem>>, %arg15: memref<1x1xf32, #tpu.memory_space<vmem>>, %arg16: memref<192x32xf32, #tpu.memory_space<vmem>>, %arg17: memref<1x32xf32, #tpu.memory_space<vmem>>, %arg18: memref<32x16xf32, #tpu.memory_space<vmem>>, %arg19: memref<1x16xf32, #tpu.memory_space<vmem>>, %arg20: memref<16x4xf32, #tpu.memory_space<vmem>>, %arg21: memref<1x4xf32, #tpu.memory_space<vmem>>, %arg22: memref<2x4xf32, #tpu.memory_space<vmem>>) attributes {dimension_semantics = [], scalar_prefetch = 0 : i64, scratch_operands = 0 : i64, tpu.core_type = #tpu.core_type<tc>} {
    %0 = tpu.iota {dimensions = array<i32: 0>} : vector<12x12xi32>
    %1 = tpu.iota {dimensions = array<i32: 1>} : vector<12x12xi32>
    %2 = arith.cmpi eq, %0, %1 : vector<12x12xi32>
    %3 = arith.extui %2 : vector<12x12xi1> to vector<12x12xi32>
    %4 = arith.sitofp %3 : vector<12x12xi32> to vector<12x12xf32>
    %cst = arith.constant 1.000000e+00 : f32
    %5 = vector.broadcast %cst : f32 to vector<12x12xf32>
    %cst_0 = arith.constant 1.000000e+00 : f32
    %6 = vector.broadcast %cst_0 : f32 to vector<1x12xf32>
    %c0 = arith.constant 0 : index
    %c0_1 = arith.constant 0 : index
    %7 = vector.load %arg0[%c0, %c0_1] : memref<12x8xf32, #tpu.memory_space<vmem>>, vector<12x8xf32>
    %c0_2 = arith.constant 0 : index
    %c0_3 = arith.constant 0 : index
    %8 = vector.load %arg6[%c0_2, %c0_3] : memref<8x16xf32, #tpu.memory_space<vmem>>, vector<8x16xf32>
    %cst_4 = arith.constant dense<0.000000e+00> : vector<12x16xf32>
    %9 = tpu.matmul %7, %8, %cst_4 {dimension_numbers = #tpu.dot_dimension_numbers<[1], [0], [0], [1], [0, 0, 1, 1], [], []>} : vector<12x8xf32>, vector<8x16xf32>, vector<12x16xf32> -> vector<12x16xf32>
    %c0_5 = arith.constant 0 : index
    %c0_6 = arith.constant 0 : index
    %10 = vector.load %arg7[%c0_5, %c0_6] : memref<1x16xf32, #tpu.memory_space<vmem>>, vector<1x16xf32>
    %11 = vector.broadcast %10 : vector<1x16xf32> to vector<12x16xf32>
    %12 = arith.addf %9, %11 : vector<12x16xf32>
    %cst_7 = arith.constant 0.000000e+00 : f32
    %13 = vector.broadcast %cst_7 : f32 to vector<12x16xf32>
    %14 = arith.cmpf ogt, %12, %13 : vector<12x16xf32>
    %cst_8 = arith.constant 0.000000e+00 : f32
    %15 = vector.broadcast %cst_8 : f32 to vector<12x16xf32>
    %16 = arith.minimumf %12, %15 : vector<12x16xf32>
    %17 = math.exp %16 : vector<12x16xf32>
    %cst_9 = arith.constant 1.000000e+00 : f32
    %18 = vector.broadcast %cst_9 : f32 to vector<12x16xf32>
    %19 = arith.subf %17, %18 : vector<12x16xf32>
    %20 = arith.select %14, %12, %19 : vector<12x16xi1>, vector<12x16xf32>
    %c0_10 = arith.constant 0 : index
    %c0_11 = arith.constant 0 : index
    %21 = vector.load %arg8[%c0_10, %c0_11] : memref<16x96xf32, #tpu.memory_space<vmem>>, vector<16x96xf32>
    %cst_12 = arith.constant dense<0.000000e+00> : vector<12x96xf32>
    %22 = tpu.matmul %20, %21, %cst_12 {dimension_numbers = #tpu.dot_dimension_numbers<[1], [0], [0], [1], [0, 0, 1, 1], [], []>} : vector<12x16xf32>, vector<16x96xf32>, vector<12x96xf32> -> vector<12x96xf32>
    %23 = tpu.iota {dimensions = array<i32: 1>} : vector<24x12xi32>
    %c0_13 = arith.constant 0 : index
    %c0_14 = arith.constant 0 : index
    %24 = vector.load %arg1[%c0_13, %c0_14] : memref<24x1xi32, #tpu.memory_space<vmem>>, vector<24x1xi32>
    %25 = vector.broadcast %24 : vector<24x1xi32> to vector<24x12xi32>
    %26 = arith.cmpi eq, %23, %25 : vector<24x12xi32>
    %27 = arith.extui %26 : vector<24x12xi1> to vector<24x12xi32>
    %28 = arith.sitofp %27 : vector<24x12xi32> to vector<24x12xf32>
    %29 = tpu.iota {dimensions = array<i32: 0>} : vector<12x24xi32>
    %c0_15 = arith.constant 0 : index
    %c0_16 = arith.constant 0 : index
    %30 = vector.load %arg2[%c0_15, %c0_16] : memref<1x24xi32, #tpu.memory_space<vmem>>, vector<1x24xi32>
    %31 = vector.broadcast %30 : vector<1x24xi32> to vector<12x24xi32>
    %32 = arith.cmpi eq, %29, %31 : vector<12x24xi32>
    %33 = arith.extui %32 : vector<12x24xi1> to vector<12x24xi32>
    %34 = arith.sitofp %33 : vector<12x24xi32> to vector<12x24xf32>
    %cst_17 = arith.constant dense<0.000000e+00> : vector<12x12xf32>
    %35 = tpu.matmul %34, %28, %cst_17 {dimension_numbers = #tpu.dot_dimension_numbers<[1], [0], [0], [1], [0, 0, 1, 1], [], []>} : vector<12x24xf32>, vector<24x12xf32>, vector<12x12xf32> -> vector<12x12xf32>
    %cst_18 = arith.constant dense<0.000000e+00> : vector<12xf32>
    %36 = vector.multi_reduction <add>, %34, %cst_18 [1] : vector<12x24xf32> to vector<12xf32>
    %37 = vector.shape_cast %36 : vector<12xf32> to vector<12x1xf32>
    %c0_19 = arith.constant 0 : index
    %c0_20 = arith.constant 0 : index
    %38 = vector.load %arg3[%c0_19, %c0_20] : memref<24x2xf32, #tpu.memory_space<vmem>>, vector<24x2xf32>
    %cst_21 = arith.constant dense<0.000000e+00> : vector<12x2xf32>
    %39 = tpu.matmul %34, %38, %cst_21 {dimension_numbers = #tpu.dot_dimension_numbers<[1], [0], [0], [1], [0, 0, 1, 1], [], []>} : vector<12x24xf32>, vector<24x2xf32>, vector<12x2xf32> -> vector<12x2xf32>
    %cst_22 = arith.constant 1.000000e+00 : f32
    %40 = vector.broadcast %cst_22 : f32 to vector<12x1xf32>
    %41 = arith.maximumf %37, %40 : vector<12x1xf32>
    %42 = vector.broadcast %41 : vector<12x1xf32> to vector<12x2xf32>
    %43 = arith.divf %39, %42 : vector<12x2xf32>
    %c0_23 = arith.constant 0 : index
    %c0_24 = arith.constant 0 : index
    %44 = vector.load %arg3[%c0_23, %c0_24] : memref<24x2xf32, #tpu.memory_space<vmem>>, vector<24x2xf32>
    %c0_25 = arith.constant 0 : index
    %c0_26 = arith.constant 0 : index
    %45 = vector.load %arg9[%c0_25, %c0_26] : memref<2x96xf32, #tpu.memory_space<vmem>>, vector<2x96xf32>
    %cst_27 = arith.constant dense<0.000000e+00> : vector<24x96xf32>
    %46 = tpu.matmul %44, %45, %cst_27 {dimension_numbers = #tpu.dot_dimension_numbers<[1], [0], [0], [1], [0, 0, 1, 1], [], []>} : vector<24x2xf32>, vector<2x96xf32>, vector<24x96xf32> -> vector<24x96xf32>
    %c0_28 = arith.constant 0 : index
    %c0_29 = arith.constant 0 : index
    %47 = vector.load %arg9[%c0_28, %c0_29] : memref<2x96xf32, #tpu.memory_space<vmem>>, vector<2x96xf32>
    %cst_30 = arith.constant dense<0.000000e+00> : vector<12x96xf32>
    %48 = tpu.matmul %43, %47, %cst_30 {dimension_numbers = #tpu.dot_dimension_numbers<[1], [0], [0], [1], [0, 0, 1, 1], [], []>} : vector<12x2xf32>, vector<2x96xf32>, vector<12x96xf32> -> vector<12x96xf32>
    %c0_31 = arith.constant 0 : index
    %c0_32 = arith.constant 0 : index
    %49 = vector.load %arg10[%c0_31, %c0_32] : memref<3x32xf32, #tpu.memory_space<vmem>>, vector<3x32xf32>
    %c0_33 = arith.constant 0 : index
    %c0_34 = arith.constant 0 : index
    %50 = vector.load %arg11[%c0_33, %c0_34] : memref<3x32xf32, #tpu.memory_space<vmem>>, vector<3x32xf32>
    %c0_35 = arith.constant 0 : index
    %c0_36 = arith.constant 0 : index
    %51 = vector.load %arg12[%c0_35, %c0_36] : memref<3x32xf32, #tpu.memory_space<vmem>>, vector<3x32xf32>
    %c0_37 = arith.constant 0 : index
    %c0_38 = arith.constant 0 : index
    %52 = vector.load %arg13[%c0_37, %c0_38] : memref<1x96xf32, #tpu.memory_space<vmem>>, vector<1x96xf32>
    %53 = arith.addf %35, %4 : vector<12x12xf32>
    %54 = vector.extract_strided_slice %22 {offsets = [0, 0], sizes = [12, 32], strides = [1, 1]} : vector<12x96xf32> to vector<12x32xf32>
    %55 = vector.extract_strided_slice %49 {offsets = [0, 0], sizes = [1, 32], strides = [1, 1]} : vector<3x32xf32> to vector<1x32xf32>
    %56 = vector.broadcast %55 : vector<1x32xf32> to vector<12x32xf32>
    %57 = arith.mulf %54, %56 : vector<12x32xf32>
    %cst_39 = arith.constant dense<0.000000e+00> : vector<12xf32>
    %58 = vector.multi_reduction <add>, %57, %cst_39 [1] : vector<12x32xf32> to vector<12xf32>
    %59 = vector.shape_cast %58 : vector<12xf32> to vector<12x1xf32>
    %60 = vector.extract_strided_slice %50 {offsets = [0, 0], sizes = [1, 32], strides = [1, 1]} : vector<3x32xf32> to vector<1x32xf32>
    %61 = vector.broadcast %60 : vector<1x32xf32> to vector<12x32xf32>
    %62 = arith.mulf %54, %61 : vector<12x32xf32>
    %cst_40 = arith.constant dense<0.000000e+00> : vector<12xf32>
    %63 = vector.multi_reduction <add>, %62, %cst_40 [1] : vector<12x32xf32> to vector<12xf32>
    %64 = vector.shape_cast %63 : vector<12xf32> to vector<12x1xf32>
    %65 = vector.extract_strided_slice %46 {offsets = [0, 0], sizes = [24, 32], strides = [1, 1]} : vector<24x96xf32> to vector<24x32xf32>
    %66 = vector.extract_strided_slice %51 {offsets = [0, 0], sizes = [1, 32], strides = [1, 1]} : vector<3x32xf32> to vector<1x32xf32>
    %67 = vector.broadcast %66 : vector<1x32xf32> to vector<24x32xf32>
    %68 = arith.mulf %65, %67 : vector<24x32xf32>
    %cst_41 = arith.constant dense<0.000000e+00> : vector<24xf32>
    %69 = vector.multi_reduction <add>, %68, %cst_41 [1] : vector<24x32xf32> to vector<24xf32>
    %70 = vector.shape_cast %69 : vector<24xf32> to vector<24x1xf32>
    %71 = vector.extract_strided_slice %48 {offsets = [0, 0], sizes = [12, 32], strides = [1, 1]} : vector<12x96xf32> to vector<12x32xf32>
    %72 = vector.extract_strided_slice %51 {offsets = [0, 0], sizes = [1, 32], strides = [1, 1]} : vector<3x32xf32> to vector<1x32xf32>
    %73 = vector.broadcast %72 : vector<1x32xf32> to vector<12x32xf32>
    %74 = arith.mulf %71, %73 : vector<12x32xf32>
    %cst_42 = arith.constant dense<0.000000e+00> : vector<12xf32>
    %75 = vector.multi_reduction <add>, %74, %cst_42 [1] : vector<12x32xf32> to vector<12xf32>
    %76 = vector.shape_cast %75 : vector<12xf32> to vector<12x1xf32>
    %77 = vector.broadcast %59 : vector<12x1xf32> to vector<12x12xf32>
    %78 = arith.mulf %4, %77 : vector<12x12xf32>
    %cst_43 = arith.constant dense<0.000000e+00> : vector<12x12xf32>
    %79 = tpu.matmul %5, %78, %cst_43 {dimension_numbers = #tpu.dot_dimension_numbers<[1], [0], [0], [1], [0, 0, 1, 1], [], []>} : vector<12x12xf32>, vector<12x12xf32>, vector<12x12xf32> -> vector<12x12xf32>
    %80 = vector.broadcast %64 : vector<12x1xf32> to vector<12x12xf32>
    %81 = arith.addf %80, %79 : vector<12x12xf32>
    %82 = vector.broadcast %70 : vector<24x1xf32> to vector<24x12xf32>
    %83 = arith.mulf %82, %28 : vector<24x12xf32>
    %cst_44 = arith.constant dense<0.000000e+00> : vector<12x12xf32>
    %84 = tpu.matmul %34, %83, %cst_44 {dimension_numbers = #tpu.dot_dimension_numbers<[1], [0], [0], [1], [0, 0, 1, 1], [], []>} : vector<12x24xf32>, vector<24x12xf32>, vector<12x12xf32> -> vector<12x12xf32>
    %85 = arith.addf %81, %84 : vector<12x12xf32>
    %86 = vector.broadcast %76 : vector<12x1xf32> to vector<12x12xf32>
    %87 = arith.mulf %4, %86 : vector<12x12xf32>
    %88 = arith.addf %85, %87 : vector<12x12xf32>
    %cst_45 = arith.constant 0.000000e+00 : f32
    %89 = vector.broadcast %cst_45 : f32 to vector<12x12xf32>
    %90 = arith.cmpf ogt, %88, %89 : vector<12x12xf32>
    %cst_46 = arith.constant 2.000000e-01 : f32
    %91 = vector.broadcast %cst_46 : f32 to vector<12x12xf32>
    %92 = arith.mulf %91, %88 : vector<12x12xf32>
    %93 = arith.select %90, %88, %92 : vector<12x12xi1>, vector<12x12xf32>
    %cst_47 = arith.constant 0.000000e+00 : f32
    %94 = vector.broadcast %cst_47 : f32 to vector<12x12xf32>
    %95 = arith.cmpf ogt, %53, %94 : vector<12x12xf32>
    %cst_48 = arith.constant -1.000000e+30 : f32
    %96 = vector.broadcast %cst_48 : f32 to vector<12x12xf32>
    %97 = arith.select %95, %93, %96 : vector<12x12xi1>, vector<12x12xf32>
    %cst_49 = arith.constant dense<0xFF800000> : vector<12xf32>
    %98 = vector.multi_reduction <maximumf>, %97, %cst_49 [1] : vector<12x12xf32> to vector<12xf32>
    %99 = vector.shape_cast %98 : vector<12xf32> to vector<12x1xf32>
    %100 = vector.broadcast %99 : vector<12x1xf32> to vector<12x12xf32>
    %101 = arith.subf %97, %100 : vector<12x12xf32>
    %102 = math.exp %101 : vector<12x12xf32>
    %cst_50 = arith.constant dense<0.000000e+00> : vector<12xf32>
    %103 = vector.multi_reduction <add>, %102, %cst_50 [1] : vector<12x12xf32> to vector<12xf32>
    %104 = vector.shape_cast %103 : vector<12xf32> to vector<12x1xf32>
    %105 = tpu.reciprocal %104 {approx = true} : vector<12x1xf32> -> vector<12x1xf32>
    %106 = vector.broadcast %105 : vector<12x1xf32> to vector<12x12xf32>
    %107 = arith.mulf %102, %106 : vector<12x12xf32>
    %cst_51 = arith.constant dense<0.000000e+00> : vector<12x32xf32>
    %108 = tpu.matmul %107, %54, %cst_51 {dimension_numbers = #tpu.dot_dimension_numbers<[1], [0], [0], [1], [0, 0, 1, 1], [], []>} : vector<12x12xf32>, vector<12x32xf32>, vector<12x32xf32> -> vector<12x32xf32>
    %109 = vector.extract_strided_slice %52 {offsets = [0, 0], sizes = [1, 32], strides = [1, 1]} : vector<1x96xf32> to vector<1x32xf32>
    %110 = vector.broadcast %109 : vector<1x32xf32> to vector<12x32xf32>
    %111 = arith.addf %108, %110 : vector<12x32xf32>
    %cst_52 = arith.constant 0.000000e+00 : f32
    %112 = vector.broadcast %cst_52 : f32 to vector<12x32xf32>
    %113 = arith.maximumf %111, %112 : vector<12x32xf32>
    %114 = vector.extract_strided_slice %22 {offsets = [0, 32], sizes = [12, 32], strides = [1, 1]} : vector<12x96xf32> to vector<12x32xf32>
    %115 = vector.extract_strided_slice %49 {offsets = [1, 0], sizes = [1, 32], strides = [1, 1]} : vector<3x32xf32> to vector<1x32xf32>
    %116 = vector.broadcast %115 : vector<1x32xf32> to vector<12x32xf32>
    %117 = arith.mulf %114, %116 : vector<12x32xf32>
    %cst_53 = arith.constant dense<0.000000e+00> : vector<12xf32>
    %118 = vector.multi_reduction <add>, %117, %cst_53 [1] : vector<12x32xf32> to vector<12xf32>
    %119 = vector.shape_cast %118 : vector<12xf32> to vector<12x1xf32>
    %120 = vector.extract_strided_slice %50 {offsets = [1, 0], sizes = [1, 32], strides = [1, 1]} : vector<3x32xf32> to vector<1x32xf32>
    %121 = vector.broadcast %120 : vector<1x32xf32> to vector<12x32xf32>
    %122 = arith.mulf %114, %121 : vector<12x32xf32>
    %cst_54 = arith.constant dense<0.000000e+00> : vector<12xf32>
    %123 = vector.multi_reduction <add>, %122, %cst_54 [1] : vector<12x32xf32> to vector<12xf32>
    %124 = vector.shape_cast %123 : vector<12xf32> to vector<12x1xf32>
    %125 = vector.extract_strided_slice %46 {offsets = [0, 32], sizes = [24, 32], strides = [1, 1]} : vector<24x96xf32> to vector<24x32xf32>
    %126 = vector.extract_strided_slice %51 {offsets = [1, 0], sizes = [1, 32], strides = [1, 1]} : vector<3x32xf32> to vector<1x32xf32>
    %127 = vector.broadcast %126 : vector<1x32xf32> to vector<24x32xf32>
    %128 = arith.mulf %125, %127 : vector<24x32xf32>
    %cst_55 = arith.constant dense<0.000000e+00> : vector<24xf32>
    %129 = vector.multi_reduction <add>, %128, %cst_55 [1] : vector<24x32xf32> to vector<24xf32>
    %130 = vector.shape_cast %129 : vector<24xf32> to vector<24x1xf32>
    %131 = vector.extract_strided_slice %48 {offsets = [0, 32], sizes = [12, 32], strides = [1, 1]} : vector<12x96xf32> to vector<12x32xf32>
    %132 = vector.extract_strided_slice %51 {offsets = [1, 0], sizes = [1, 32], strides = [1, 1]} : vector<3x32xf32> to vector<1x32xf32>
    %133 = vector.broadcast %132 : vector<1x32xf32> to vector<12x32xf32>
    %134 = arith.mulf %131, %133 : vector<12x32xf32>
    %cst_56 = arith.constant dense<0.000000e+00> : vector<12xf32>
    %135 = vector.multi_reduction <add>, %134, %cst_56 [1] : vector<12x32xf32> to vector<12xf32>
    %136 = vector.shape_cast %135 : vector<12xf32> to vector<12x1xf32>
    %137 = vector.broadcast %119 : vector<12x1xf32> to vector<12x12xf32>
    %138 = arith.mulf %4, %137 : vector<12x12xf32>
    %cst_57 = arith.constant dense<0.000000e+00> : vector<12x12xf32>
    %139 = tpu.matmul %5, %138, %cst_57 {dimension_numbers = #tpu.dot_dimension_numbers<[1], [0], [0], [1], [0, 0, 1, 1], [], []>} : vector<12x12xf32>, vector<12x12xf32>, vector<12x12xf32> -> vector<12x12xf32>
    %140 = vector.broadcast %124 : vector<12x1xf32> to vector<12x12xf32>
    %141 = arith.addf %140, %139 : vector<12x12xf32>
    %142 = vector.broadcast %130 : vector<24x1xf32> to vector<24x12xf32>
    %143 = arith.mulf %142, %28 : vector<24x12xf32>
    %cst_58 = arith.constant dense<0.000000e+00> : vector<12x12xf32>
    %144 = tpu.matmul %34, %143, %cst_58 {dimension_numbers = #tpu.dot_dimension_numbers<[1], [0], [0], [1], [0, 0, 1, 1], [], []>} : vector<12x24xf32>, vector<24x12xf32>, vector<12x12xf32> -> vector<12x12xf32>
    %145 = arith.addf %141, %144 : vector<12x12xf32>
    %146 = vector.broadcast %136 : vector<12x1xf32> to vector<12x12xf32>
    %147 = arith.mulf %4, %146 : vector<12x12xf32>
    %148 = arith.addf %145, %147 : vector<12x12xf32>
    %cst_59 = arith.constant 0.000000e+00 : f32
    %149 = vector.broadcast %cst_59 : f32 to vector<12x12xf32>
    %150 = arith.cmpf ogt, %148, %149 : vector<12x12xf32>
    %cst_60 = arith.constant 2.000000e-01 : f32
    %151 = vector.broadcast %cst_60 : f32 to vector<12x12xf32>
    %152 = arith.mulf %151, %148 : vector<12x12xf32>
    %153 = arith.select %150, %148, %152 : vector<12x12xi1>, vector<12x12xf32>
    %cst_61 = arith.constant 0.000000e+00 : f32
    %154 = vector.broadcast %cst_61 : f32 to vector<12x12xf32>
    %155 = arith.cmpf ogt, %53, %154 : vector<12x12xf32>
    %cst_62 = arith.constant -1.000000e+30 : f32
    %156 = vector.broadcast %cst_62 : f32 to vector<12x12xf32>
    %157 = arith.select %155, %153, %156 : vector<12x12xi1>, vector<12x12xf32>
    %cst_63 = arith.constant dense<0xFF800000> : vector<12xf32>
    %158 = vector.multi_reduction <maximumf>, %157, %cst_63 [1] : vector<12x12xf32> to vector<12xf32>
    %159 = vector.shape_cast %158 : vector<12xf32> to vector<12x1xf32>
    %160 = vector.broadcast %159 : vector<12x1xf32> to vector<12x12xf32>
    %161 = arith.subf %157, %160 : vector<12x12xf32>
    %162 = math.exp %161 : vector<12x12xf32>
    %cst_64 = arith.constant dense<0.000000e+00> : vector<12xf32>
    %163 = vector.multi_reduction <add>, %162, %cst_64 [1] : vector<12x12xf32> to vector<12xf32>
    %164 = vector.shape_cast %163 : vector<12xf32> to vector<12x1xf32>
    %165 = tpu.reciprocal %164 {approx = true} : vector<12x1xf32> -> vector<12x1xf32>
    %166 = vector.broadcast %165 : vector<12x1xf32> to vector<12x12xf32>
    %167 = arith.mulf %162, %166 : vector<12x12xf32>
    %cst_65 = arith.constant dense<0.000000e+00> : vector<12x32xf32>
    %168 = tpu.matmul %167, %114, %cst_65 {dimension_numbers = #tpu.dot_dimension_numbers<[1], [0], [0], [1], [0, 0, 1, 1], [], []>} : vector<12x12xf32>, vector<12x32xf32>, vector<12x32xf32> -> vector<12x32xf32>
    %169 = vector.extract_strided_slice %52 {offsets = [0, 32], sizes = [1, 32], strides = [1, 1]} : vector<1x96xf32> to vector<1x32xf32>
    %170 = vector.broadcast %169 : vector<1x32xf32> to vector<12x32xf32>
    %171 = arith.addf %168, %170 : vector<12x32xf32>
    %cst_66 = arith.constant 0.000000e+00 : f32
    %172 = vector.broadcast %cst_66 : f32 to vector<12x32xf32>
    %173 = arith.maximumf %171, %172 : vector<12x32xf32>
    %174 = vector.extract_strided_slice %22 {offsets = [0, 64], sizes = [12, 32], strides = [1, 1]} : vector<12x96xf32> to vector<12x32xf32>
    %175 = vector.extract_strided_slice %49 {offsets = [2, 0], sizes = [1, 32], strides = [1, 1]} : vector<3x32xf32> to vector<1x32xf32>
    %176 = vector.broadcast %175 : vector<1x32xf32> to vector<12x32xf32>
    %177 = arith.mulf %174, %176 : vector<12x32xf32>
    %cst_67 = arith.constant dense<0.000000e+00> : vector<12xf32>
    %178 = vector.multi_reduction <add>, %177, %cst_67 [1] : vector<12x32xf32> to vector<12xf32>
    %179 = vector.shape_cast %178 : vector<12xf32> to vector<12x1xf32>
    %180 = vector.extract_strided_slice %50 {offsets = [2, 0], sizes = [1, 32], strides = [1, 1]} : vector<3x32xf32> to vector<1x32xf32>
    %181 = vector.broadcast %180 : vector<1x32xf32> to vector<12x32xf32>
    %182 = arith.mulf %174, %181 : vector<12x32xf32>
    %cst_68 = arith.constant dense<0.000000e+00> : vector<12xf32>
    %183 = vector.multi_reduction <add>, %182, %cst_68 [1] : vector<12x32xf32> to vector<12xf32>
    %184 = vector.shape_cast %183 : vector<12xf32> to vector<12x1xf32>
    %185 = vector.extract_strided_slice %46 {offsets = [0, 64], sizes = [24, 32], strides = [1, 1]} : vector<24x96xf32> to vector<24x32xf32>
    %186 = vector.extract_strided_slice %51 {offsets = [2, 0], sizes = [1, 32], strides = [1, 1]} : vector<3x32xf32> to vector<1x32xf32>
    %187 = vector.broadcast %186 : vector<1x32xf32> to vector<24x32xf32>
    %188 = arith.mulf %185, %187 : vector<24x32xf32>
    %cst_69 = arith.constant dense<0.000000e+00> : vector<24xf32>
    %189 = vector.multi_reduction <add>, %188, %cst_69 [1] : vector<24x32xf32> to vector<24xf32>
    %190 = vector.shape_cast %189 : vector<24xf32> to vector<24x1xf32>
    %191 = vector.extract_strided_slice %48 {offsets = [0, 64], sizes = [12, 32], strides = [1, 1]} : vector<12x96xf32> to vector<12x32xf32>
    %192 = vector.extract_strided_slice %51 {offsets = [2, 0], sizes = [1, 32], strides = [1, 1]} : vector<3x32xf32> to vector<1x32xf32>
    %193 = vector.broadcast %192 : vector<1x32xf32> to vector<12x32xf32>
    %194 = arith.mulf %191, %193 : vector<12x32xf32>
    %cst_70 = arith.constant dense<0.000000e+00> : vector<12xf32>
    %195 = vector.multi_reduction <add>, %194, %cst_70 [1] : vector<12x32xf32> to vector<12xf32>
    %196 = vector.shape_cast %195 : vector<12xf32> to vector<12x1xf32>
    %197 = vector.broadcast %179 : vector<12x1xf32> to vector<12x12xf32>
    %198 = arith.mulf %4, %197 : vector<12x12xf32>
    %cst_71 = arith.constant dense<0.000000e+00> : vector<12x12xf32>
    %199 = tpu.matmul %5, %198, %cst_71 {dimension_numbers = #tpu.dot_dimension_numbers<[1], [0], [0], [1], [0, 0, 1, 1], [], []>} : vector<12x12xf32>, vector<12x12xf32>, vector<12x12xf32> -> vector<12x12xf32>
    %200 = vector.broadcast %184 : vector<12x1xf32> to vector<12x12xf32>
    %201 = arith.addf %200, %199 : vector<12x12xf32>
    %202 = vector.broadcast %190 : vector<24x1xf32> to vector<24x12xf32>
    %203 = arith.mulf %202, %28 : vector<24x12xf32>
    %cst_72 = arith.constant dense<0.000000e+00> : vector<12x12xf32>
    %204 = tpu.matmul %34, %203, %cst_72 {dimension_numbers = #tpu.dot_dimension_numbers<[1], [0], [0], [1], [0, 0, 1, 1], [], []>} : vector<12x24xf32>, vector<24x12xf32>, vector<12x12xf32> -> vector<12x12xf32>
    %205 = arith.addf %201, %204 : vector<12x12xf32>
    %206 = vector.broadcast %196 : vector<12x1xf32> to vector<12x12xf32>
    %207 = arith.mulf %4, %206 : vector<12x12xf32>
    %208 = arith.addf %205, %207 : vector<12x12xf32>
    %cst_73 = arith.constant 0.000000e+00 : f32
    %209 = vector.broadcast %cst_73 : f32 to vector<12x12xf32>
    %210 = arith.cmpf ogt, %208, %209 : vector<12x12xf32>
    %cst_74 = arith.constant 2.000000e-01 : f32
    %211 = vector.broadcast %cst_74 : f32 to vector<12x12xf32>
    %212 = arith.mulf %211, %208 : vector<12x12xf32>
    %213 = arith.select %210, %208, %212 : vector<12x12xi1>, vector<12x12xf32>
    %cst_75 = arith.constant 0.000000e+00 : f32
    %214 = vector.broadcast %cst_75 : f32 to vector<12x12xf32>
    %215 = arith.cmpf ogt, %53, %214 : vector<12x12xf32>
    %cst_76 = arith.constant -1.000000e+30 : f32
    %216 = vector.broadcast %cst_76 : f32 to vector<12x12xf32>
    %217 = arith.select %215, %213, %216 : vector<12x12xi1>, vector<12x12xf32>
    %cst_77 = arith.constant dense<0xFF800000> : vector<12xf32>
    %218 = vector.multi_reduction <maximumf>, %217, %cst_77 [1] : vector<12x12xf32> to vector<12xf32>
    %219 = vector.shape_cast %218 : vector<12xf32> to vector<12x1xf32>
    %220 = vector.broadcast %219 : vector<12x1xf32> to vector<12x12xf32>
    %221 = arith.subf %217, %220 : vector<12x12xf32>
    %222 = math.exp %221 : vector<12x12xf32>
    %cst_78 = arith.constant dense<0.000000e+00> : vector<12xf32>
    %223 = vector.multi_reduction <add>, %222, %cst_78 [1] : vector<12x12xf32> to vector<12xf32>
    %224 = vector.shape_cast %223 : vector<12xf32> to vector<12x1xf32>
    %225 = tpu.reciprocal %224 {approx = true} : vector<12x1xf32> -> vector<12x1xf32>
    %226 = vector.broadcast %225 : vector<12x1xf32> to vector<12x12xf32>
    %227 = arith.mulf %222, %226 : vector<12x12xf32>
    %cst_79 = arith.constant dense<0.000000e+00> : vector<12x32xf32>
    %228 = tpu.matmul %227, %174, %cst_79 {dimension_numbers = #tpu.dot_dimension_numbers<[1], [0], [0], [1], [0, 0, 1, 1], [], []>} : vector<12x12xf32>, vector<12x32xf32>, vector<12x32xf32> -> vector<12x32xf32>
    %229 = vector.extract_strided_slice %52 {offsets = [0, 64], sizes = [1, 32], strides = [1, 1]} : vector<1x96xf32> to vector<1x32xf32>
    %230 = vector.broadcast %229 : vector<1x32xf32> to vector<12x32xf32>
    %231 = arith.addf %228, %230 : vector<12x32xf32>
    %cst_80 = arith.constant 0.000000e+00 : f32
    %232 = vector.broadcast %cst_80 : f32 to vector<12x32xf32>
    %233 = arith.maximumf %231, %232 : vector<12x32xf32>
    %234 = tpu.concatenate %113, %173, %233 in 1 : vector<12x32xf32>, vector<12x32xf32>, vector<12x32xf32> -> vector<12x96xf32>
    %cst_81 = arith.constant 1.000000e+00 : f32
    %235 = vector.broadcast %cst_81 : f32 to vector<12x12xf32>
    %236 = arith.minimumf %35, %235 : vector<12x12xf32>
    %237 = arith.addf %236, %4 : vector<12x12xf32>
    %cst_82 = arith.constant dense<0.000000e+00> : vector<12xf32>
    %238 = vector.multi_reduction <add>, %237, %cst_82 [1] : vector<12x12xf32> to vector<12xf32>
    %239 = vector.shape_cast %238 : vector<12xf32> to vector<12x1xf32>
    %240 = math.rsqrt %239 : vector<12x1xf32>
    %241 = vector.broadcast %240 : vector<12x1xf32> to vector<12x12xf32>
    %242 = arith.mulf %241, %237 : vector<12x12xf32>
    %243 = vector.broadcast %240 : vector<12x1xf32> to vector<12x12xf32>
    %244 = arith.mulf %4, %243 : vector<12x12xf32>
    %cst_83 = arith.constant dense<0.000000e+00> : vector<12x12xf32>
    %245 = tpu.matmul %5, %244, %cst_83 {dimension_numbers = #tpu.dot_dimension_numbers<[1], [0], [0], [1], [0, 0, 1, 1], [], []>} : vector<12x12xf32>, vector<12x12xf32>, vector<12x12xf32> -> vector<12x12xf32>
    %246 = arith.mulf %242, %245 : vector<12x12xf32>
    %c0_84 = arith.constant 0 : index
    %c0_85 = arith.constant 0 : index
    %247 = vector.load %arg14[%c0_84, %c0_85] : memref<1x96xf32, #tpu.memory_space<vmem>>, vector<1x96xf32>
    %248 = vector.broadcast %247 : vector<1x96xf32> to vector<12x96xf32>
    %249 = arith.mulf %234, %248 : vector<12x96xf32>
    %cst_86 = arith.constant dense<0.000000e+00> : vector<12xf32>
    %250 = vector.multi_reduction <add>, %249, %cst_86 [1] : vector<12x96xf32> to vector<12xf32>
    %251 = vector.shape_cast %250 : vector<12xf32> to vector<12x1xf32>
    %cst_87 = arith.constant dense<0.000000e+00> : vector<12x1xf32>
    %252 = tpu.matmul %246, %251, %cst_87 {dimension_numbers = #tpu.dot_dimension_numbers<[1], [0], [0], [1], [0, 0, 1, 1], [], []>} : vector<12x12xf32>, vector<12x1xf32>, vector<12x1xf32> -> vector<12x1xf32>
    %c0_88 = arith.constant 0 : index
    %c0_89 = arith.constant 0 : index
    %253 = vector.load %arg15[%c0_88, %c0_89] : memref<1x1xf32, #tpu.memory_space<vmem>>, vector<1x1xf32>
    %254 = vector.broadcast %253 : vector<1x1xf32> to vector<12x1xf32>
    %255 = arith.addf %252, %254 : vector<12x1xf32>
    %c0_90 = arith.constant 0 : index
    %c0_91 = arith.constant 0 : index
    %256 = vector.load %arg4[%c0_90, %c0_91] : memref<12x1xi32, #tpu.memory_space<vmem>>, vector<12x1xi32>
    %c0_92 = arith.constant 0 : index
    %c0_93 = arith.constant 0 : index
    %257 = vector.load %arg5[%c0_92, %c0_93] : memref<1x12xi32, #tpu.memory_space<vmem>>, vector<1x12xi32>
    %258 = vector.broadcast %256 : vector<12x1xi32> to vector<12x12xi32>
    %259 = vector.broadcast %257 : vector<1x12xi32> to vector<12x12xi32>
    %260 = arith.cmpi eq, %258, %259 : vector<12x12xi32>
    %261 = vector.broadcast %255 : vector<12x1xf32> to vector<12x12xf32>
    %262 = arith.mulf %4, %261 : vector<12x12xf32>
    %cst_94 = arith.constant dense<0.000000e+00> : vector<12x12xf32>
    %263 = tpu.matmul %5, %262, %cst_94 {dimension_numbers = #tpu.dot_dimension_numbers<[1], [0], [0], [1], [0, 0, 1, 1], [], []>} : vector<12x12xf32>, vector<12x12xf32>, vector<12x12xf32> -> vector<12x12xf32>
    %264 = tpu.iota {dimensions = array<i32: 0>} : vector<12x12xi32>
    %265 = tpu.iota {dimensions = array<i32: 1>} : vector<12x12xi32>
    %266 = vector.broadcast %255 : vector<12x1xf32> to vector<12x12xf32>
    %267 = arith.cmpf ogt, %263, %266 : vector<12x12xf32>
    %268 = vector.broadcast %255 : vector<12x1xf32> to vector<12x12xf32>
    %269 = arith.cmpf oeq, %263, %268 : vector<12x12xf32>
    %270 = arith.cmpi slt, %265, %264 : vector<12x12xi32>
    %271 = arith.andi %269, %270 : vector<12x12xi1>
    %272 = arith.ori %267, %271 : vector<12x12xi1>
    %273 = arith.andi %260, %272 : vector<12x12xi1>
    %274 = arith.extui %273 : vector<12x12xi1> to vector<12x12xi32>
    %275 = arith.sitofp %274 : vector<12x12xi32> to vector<12x12xf32>
    %cst_95 = arith.constant dense<0.000000e+00> : vector<12xf32>
    %276 = vector.multi_reduction <add>, %275, %cst_95 [1] : vector<12x12xf32> to vector<12xf32>
    %277 = vector.shape_cast %276 : vector<12xf32> to vector<12x1xf32>
    %278 = tpu.iota {dimensions = array<i32: 0>} : vector<2x12xi32>
    %279 = vector.broadcast %257 : vector<1x12xi32> to vector<2x12xi32>
    %280 = arith.cmpi eq, %278, %279 : vector<2x12xi32>
    %281 = arith.extui %280 : vector<2x12xi1> to vector<2x12xi32>
    %282 = arith.sitofp %281 : vector<2x12xi32> to vector<2x12xf32>
    %283 = tpu.iota {dimensions = array<i32: 1>} : vector<12x2xi32>
    %284 = vector.broadcast %256 : vector<12x1xi32> to vector<12x2xi32>
    %285 = arith.cmpi eq, %283, %284 : vector<12x2xi32>
    %286 = arith.extui %285 : vector<12x2xi1> to vector<12x2xi32>
    %287 = arith.sitofp %286 : vector<12x2xi32> to vector<12x2xf32>
    %cst_96 = arith.constant dense<0.000000e+00> : vector<2xf32>
    %288 = vector.multi_reduction <add>, %282, %cst_96 [1] : vector<2x12xf32> to vector<2xf32>
    %289 = vector.shape_cast %288 : vector<2xf32> to vector<2x1xf32>
    %cst_97 = arith.constant 5.000000e-01 : f32
    %290 = vector.broadcast %cst_97 : f32 to vector<2x1xf32>
    %291 = arith.mulf %290, %289 : vector<2x1xf32>
    %292 = math.ceil %291 : vector<2x1xf32>
    %cst_98 = arith.constant dense<0.000000e+00> : vector<12x1xf32>
    %293 = tpu.matmul %287, %292, %cst_98 {dimension_numbers = #tpu.dot_dimension_numbers<[1], [0], [0], [1], [0, 0, 1, 1], [], []>} : vector<12x2xf32>, vector<2x1xf32>, vector<12x1xf32> -> vector<12x1xf32>
    %294 = arith.cmpf olt, %277, %293 : vector<12x1xf32>
    %295 = arith.extui %294 : vector<12x1xi1> to vector<12x1xi32>
    %296 = arith.sitofp %295 : vector<12x1xi32> to vector<12x1xf32>
    %297 = vector.broadcast %296 : vector<12x1xf32> to vector<12x12xf32>
    %298 = arith.mulf %4, %297 : vector<12x12xf32>
    %cst_99 = arith.constant dense<0.000000e+00> : vector<1x12xf32>
    %299 = tpu.matmul %6, %298, %cst_99 {dimension_numbers = #tpu.dot_dimension_numbers<[1], [0], [0], [1], [0, 0, 1, 1], [], []>} : vector<1x12xf32>, vector<12x12xf32>, vector<1x12xf32> -> vector<1x12xf32>
    %300 = math.tanh %255 : vector<12x1xf32>
    %301 = vector.broadcast %300 : vector<12x1xf32> to vector<12x96xf32>
    %302 = arith.mulf %234, %301 : vector<12x96xf32>
    %303 = vector.broadcast %299 : vector<1x12xf32> to vector<2x12xf32>
    %304 = arith.mulf %282, %303 : vector<2x12xf32>
    %305 = vector.broadcast %296 : vector<12x1xf32> to vector<12x2xf32>
    %306 = arith.mulf %287, %305 : vector<12x2xf32>
    %cst_100 = arith.constant dense<0.000000e+00> : vector<2xf32>
    %307 = vector.multi_reduction <add>, %304, %cst_100 [1] : vector<2x12xf32> to vector<2xf32>
    %308 = vector.shape_cast %307 : vector<2xf32> to vector<2x1xf32>
    %cst_101 = arith.constant dense<0.000000e+00> : vector<2x96xf32>
    %309 = tpu.matmul %304, %302, %cst_101 {dimension_numbers = #tpu.dot_dimension_numbers<[1], [0], [0], [1], [0, 0, 1, 1], [], []>} : vector<2x12xf32>, vector<12x96xf32>, vector<2x96xf32> -> vector<2x96xf32>
    %310 = tpu.reciprocal %308 {approx = true} : vector<2x1xf32> -> vector<2x1xf32>
    %311 = vector.broadcast %310 : vector<2x1xf32> to vector<2x96xf32>
    %312 = arith.mulf %309, %311 : vector<2x96xf32>
    %cst_102 = arith.constant 0.000000e+00 : f32
    %313 = vector.broadcast %cst_102 : f32 to vector<2x96xf32>
    %314 = tpu.iota {dimensions = array<i32: 0>} : vector<2x1xi32>
    %315 = vector.extract_strided_slice %306 {offsets = [0, 0], sizes = [12, 1], strides = [1, 1]} : vector<12x2xf32> to vector<12x1xf32>
    %cst_103 = arith.constant 0.000000e+00 : f32
    %316 = vector.broadcast %cst_103 : f32 to vector<12x1xf32>
    %317 = arith.cmpf ogt, %315, %316 : vector<12x1xf32>
    %cst_104 = arith.constant -1.000000e+30 : f32
    %318 = vector.shape_cast %317 : vector<12x1xi1> to vector<12x1xi1>
    %319 = vector.broadcast %318 : vector<12x1xi1> to vector<12x96xi1>
    %320 = vector.broadcast %cst_104 : f32 to vector<12x96xf32>
    %321 = arith.select %319, %302, %320 : vector<12x96xi1>, vector<12x96xf32>
    %cst_105 = arith.constant dense<0xFF800000> : vector<96xf32>
    %322 = vector.multi_reduction <maximumf>, %321, %cst_105 [0] : vector<12x96xf32> to vector<96xf32>
    %323 = vector.shape_cast %322 : vector<96xf32> to vector<1x96xf32>
    %c0_i32 = arith.constant 0 : i32
    %324 = vector.broadcast %c0_i32 : i32 to vector<2x1xi32>
    %325 = arith.cmpi eq, %314, %324 : vector<2x1xi32>
    %326 = arith.extui %325 : vector<2x1xi1> to vector<2x1xi32>
    %327 = arith.sitofp %326 : vector<2x1xi32> to vector<2x1xf32>
    %328 = vector.broadcast %327 : vector<2x1xf32> to vector<2x96xf32>
    %329 = vector.broadcast %323 : vector<1x96xf32> to vector<2x96xf32>
    %330 = arith.mulf %328, %329 : vector<2x96xf32>
    %331 = arith.addf %313, %330 : vector<2x96xf32>
    %332 = vector.extract_strided_slice %306 {offsets = [0, 1], sizes = [12, 1], strides = [1, 1]} : vector<12x2xf32> to vector<12x1xf32>
    %cst_106 = arith.constant 0.000000e+00 : f32
    %333 = vector.broadcast %cst_106 : f32 to vector<12x1xf32>
    %334 = arith.cmpf ogt, %332, %333 : vector<12x1xf32>
    %cst_107 = arith.constant -1.000000e+30 : f32
    %335 = vector.shape_cast %334 : vector<12x1xi1> to vector<12x1xi1>
    %336 = vector.broadcast %335 : vector<12x1xi1> to vector<12x96xi1>
    %337 = vector.broadcast %cst_107 : f32 to vector<12x96xf32>
    %338 = arith.select %336, %302, %337 : vector<12x96xi1>, vector<12x96xf32>
    %cst_108 = arith.constant dense<0xFF800000> : vector<96xf32>
    %339 = vector.multi_reduction <maximumf>, %338, %cst_108 [0] : vector<12x96xf32> to vector<96xf32>
    %340 = vector.shape_cast %339 : vector<96xf32> to vector<1x96xf32>
    %c1_i32 = arith.constant 1 : i32
    %341 = vector.broadcast %c1_i32 : i32 to vector<2x1xi32>
    %342 = arith.cmpi eq, %314, %341 : vector<2x1xi32>
    %343 = arith.extui %342 : vector<2x1xi1> to vector<2x1xi32>
    %344 = arith.sitofp %343 : vector<2x1xi32> to vector<2x1xf32>
    %345 = vector.broadcast %344 : vector<2x1xf32> to vector<2x96xf32>
    %346 = vector.broadcast %340 : vector<1x96xf32> to vector<2x96xf32>
    %347 = arith.mulf %345, %346 : vector<2x96xf32>
    %348 = arith.addf %331, %347 : vector<2x96xf32>
    %349 = tpu.concatenate %348, %312 in 1 : vector<2x96xf32>, vector<2x96xf32> -> vector<2x192xf32>
    %c0_109 = arith.constant 0 : index
    %c0_110 = arith.constant 0 : index
    %350 = vector.load %arg16[%c0_109, %c0_110] : memref<192x32xf32, #tpu.memory_space<vmem>>, vector<192x32xf32>
    %cst_111 = arith.constant dense<0.000000e+00> : vector<2x32xf32>
    %351 = tpu.matmul %349, %350, %cst_111 {dimension_numbers = #tpu.dot_dimension_numbers<[1], [0], [0], [1], [0, 0, 1, 1], [], []>} : vector<2x192xf32>, vector<192x32xf32>, vector<2x32xf32> -> vector<2x32xf32>
    %c0_112 = arith.constant 0 : index
    %c0_113 = arith.constant 0 : index
    %352 = vector.load %arg17[%c0_112, %c0_113] : memref<1x32xf32, #tpu.memory_space<vmem>>, vector<1x32xf32>
    %353 = vector.broadcast %352 : vector<1x32xf32> to vector<2x32xf32>
    %354 = arith.addf %351, %353 : vector<2x32xf32>
    %cst_114 = arith.constant 0.000000e+00 : f32
    %355 = vector.broadcast %cst_114 : f32 to vector<2x32xf32>
    %356 = arith.maximumf %354, %355 : vector<2x32xf32>
    %c0_115 = arith.constant 0 : index
    %c0_116 = arith.constant 0 : index
    %357 = vector.load %arg18[%c0_115, %c0_116] : memref<32x16xf32, #tpu.memory_space<vmem>>, vector<32x16xf32>
    %cst_117 = arith.constant dense<0.000000e+00> : vector<2x16xf32>
    %358 = tpu.matmul %356, %357, %cst_117 {dimension_numbers = #tpu.dot_dimension_numbers<[1], [0], [0], [1], [0, 0, 1, 1], [], []>} : vector<2x32xf32>, vector<32x16xf32>, vector<2x16xf32> -> vector<2x16xf32>
    %c0_118 = arith.constant 0 : index
    %c0_119 = arith.constant 0 : index
    %359 = vector.load %arg19[%c0_118, %c0_119] : memref<1x16xf32, #tpu.memory_space<vmem>>, vector<1x16xf32>
    %360 = vector.broadcast %359 : vector<1x16xf32> to vector<2x16xf32>
    %361 = arith.addf %358, %360 : vector<2x16xf32>
    %cst_120 = arith.constant 0.000000e+00 : f32
    %362 = vector.broadcast %cst_120 : f32 to vector<2x16xf32>
    %363 = arith.maximumf %361, %362 : vector<2x16xf32>
    %c0_121 = arith.constant 0 : index
    %c0_122 = arith.constant 0 : index
    %364 = vector.load %arg20[%c0_121, %c0_122] : memref<16x4xf32, #tpu.memory_space<vmem>>, vector<16x4xf32>
    %cst_123 = arith.constant dense<0.000000e+00> : vector<2x4xf32>
    %365 = tpu.matmul %363, %364, %cst_123 {dimension_numbers = #tpu.dot_dimension_numbers<[1], [0], [0], [1], [0, 0, 1, 1], [], []>} : vector<2x16xf32>, vector<16x4xf32>, vector<2x4xf32> -> vector<2x4xf32>
    %c0_124 = arith.constant 0 : index
    %c0_125 = arith.constant 0 : index
    %366 = vector.load %arg21[%c0_124, %c0_125] : memref<1x4xf32, #tpu.memory_space<vmem>>, vector<1x4xf32>
    %367 = vector.broadcast %366 : vector<1x4xf32> to vector<2x4xf32>
    %368 = arith.addf %365, %367 : vector<2x4xf32>
    %cst_126 = arith.constant dense<0xFF800000> : vector<2xf32>
    %369 = vector.multi_reduction <maximumf>, %368, %cst_126 [1] : vector<2x4xf32> to vector<2xf32>
    %370 = vector.shape_cast %369 : vector<2xf32> to vector<2x1xf32>
    %371 = vector.broadcast %370 : vector<2x1xf32> to vector<2x4xf32>
    %372 = arith.subf %368, %371 : vector<2x4xf32>
    %373 = math.exp %372 : vector<2x4xf32>
    %cst_127 = arith.constant dense<0.000000e+00> : vector<2xf32>
    %374 = vector.multi_reduction <add>, %373, %cst_127 [1] : vector<2x4xf32> to vector<2xf32>
    %375 = vector.shape_cast %374 : vector<2xf32> to vector<2x1xf32>
    %376 = math.log %375 : vector<2x1xf32>
    %377 = vector.broadcast %376 : vector<2x1xf32> to vector<2x4xf32>
    %378 = arith.subf %372, %377 : vector<2x4xf32>
    %c0_128 = arith.constant 0 : index
    %c0_129 = arith.constant 0 : index
    %379 = vector.load %arg22[%c0_128, %c0_129] : memref<2x4xf32, #tpu.memory_space<vmem>>, vector<2x4xf32>
    tpu.vector_store %arg22[%c0_128, %c0_129], %378 {strides = array<i32>} : memref<2x4xf32, #tpu.memory_space<vmem>>, vector<2x4xf32>,
    return
  }
}

</mosaic_0001>

<bundles_post_ra>
// kernel: net_forward.1
= control target key start
LH: loop header
LB: loop body
LE: loop exit
PB: predicated region body
PF: predicated region fallthrough
CT: control target
= control target key end

     0   :  { %s4056_s0 = inlined_call_operand.vmem [shape: f32[12,8], index: 0, kind: input, shape index: {}]   ;;  %s4057_s1 = inlined_call_operand.vmem [shape: s32[24,1], index: 1, kind: input, shape index: {}]   ;;  %s4058_s2 = inlined_call_operand.vmem [shape: s32[1,24], index: 2, kind: input, shape index: {}]   ;;  %s4059_s3 = inlined_call_operand.vmem [shape: f32[24,2], index: 3, kind: input, shape index: {}]   ;;  %s4060_s4 = inlined_call_operand.vmem [shape: s32[12,1], index: 4, kind: input, shape index: {}]   ;;  %s4061_s5 = inlined_call_operand.vmem [shape: s32[1,12], index: 5, kind: input, shape index: {}]   ;;  %s4062_s6 = inlined_call_operand.vmem [shape: f32[8,16], index: 6, kind: input, shape index: {}]   ;;  %s4063_s7 = inlined_call_operand.vmem [shape: f32[1,16], index: 7, kind: input, shape index: {}]   ;;  %s4064_s8 = inlined_call_operand.vmem [shape: f32[16,96], index: 8, kind: input, shape index: {}]   ;;  %s4065_s9 = inlined_call_operand.vmem [shape: f32[2,96], index: 9, kind: input, shape index: {}]   ;;  %s4066_s10 = inlined_call_operand.vmem [shape: f32[3,32], index: 10, kind: input, shape index: {}]   ;;  %s4067_s11 = inlined_call_operand.vmem [shape: f32[3,32], index: 11, kind: input, shape index: {}]   ;;  %s4068_s12 = inlined_call_operand.vmem [shape: f32[3,32], index: 12, kind: input, shape index: {}]   ;;  %s4069_s13 = inlined_call_operand.vmem [shape: f32[1,96], index: 13, kind: input, shape index: {}]   ;;  %s4070_s14 = inlined_call_operand.vmem [shape: f32[1,96], index: 14, kind: input, shape index: {}]   ;;  %s4071_s15 = inlined_call_operand.<no memory space> [shape: f32[1,1], index: 15, kind: input, shape index: {}]   ;;  %s4072_s16 = inlined_call_operand.vmem [shape: f32[192,32], index: 16, kind: input, shape index: {}]   ;;  %s4073_s17 = inlined_call_operand.vmem [shape: f32[1,32], index: 17, kind: input, shape index: {}]   ;;  %s4074_s18 = inlined_call_operand.vmem [shape: f32[32,16], index: 18, kind: input, shape index: {}]   ;;  %s4075_s19 = inlined_call_operand.vmem [shape: f32[1,16], index: 19, kind: input, shape index: {}]   ;;  %s4076_s20 = inlined_call_operand.vmem [shape: f32[16,4], index: 20, kind: input, shape index: {}]   ;;  %s4077_s21 = inlined_call_operand.vmem [shape: f32[1,4], index: 21, kind: input, shape index: {}]   ;;  %s4078_s22 = inlined_call_operand.hbm [shape: f32[2,4], index: 22, kind: output, shape index: {}]  }
   0x1   :  { %4092 = sst [smem:[#allocation6_spill]] %s4056_s0  ;;  %v27_v0 = vstv %s4071_s15 }
   0x2   :  { %4093 = sst [smem:[#allocation7_spill]] %s4057_s1  ;;  %28 = vst [vmem:[#allocation2] sm:$0x1] %v27_v0 }
   0x3   :  { %4094 = sst [smem:[#allocation8_spill]] %s4058_s2 }
   0x4   :  { %4095 = sst [smem:[#allocation9_spill]] %s4059_s3 }
   0x5   :  { %4096 = sst [smem:[#allocation10_spill]] %s4060_s4 }
   0x6   :  { %4097 = sst [smem:[#allocation11_spill]] %s4061_s5 }
   0x7   :  { %4098 = sst [smem:[#allocation12_spill]] %s4062_s6 }
   0x8   :  { %s4099_s4 = sld [smem:[#allocation12_spill]]  ;;  %vm95_vm0 = vcmask 64512   ;;  %v3210_v5 = vmov 0  }
   0x9   :  { %s4100_s1 = sld [smem:[#allocation6_spill]]  ;;  %3139 = vset.pattern.permute.xlu0 %v3210_v5 }
   0xa   :  { %s4101_s26 = sld [smem:[#allocation7_spill]] }
   0xe   :  { %v87_v1 = vld [vmem:[%s4099_s4] sm:$0xff] }
   0xf   :  { %v85_v2 = vld [vmem:[%s4100_s1] sm:$0xff]  ;;  %v86_v3 = vld [vmem:[%s4100_s1 + $0x8] sm:$0xf]  ;;  %2957 = vmatprep.subr.mxu0 %v87_v1 }
  0x10   :  { %2959 = vmatprep.mubr.msk.f32.mxu0 %vm95_vm0, %v85_v2  ;;  %v275_v4 = vld [vmem:[%s4101_s26 + $0x10] sm:$0xff]  ;;  %2958 = vmatpush3.msra.mxu0 %v87_v1  ;;  %v273_v6 = vld [vmem:[%s4101_s26] sm:$0xff] }
  0x11   :  { %29 = vsyncpa [#allocation4], 0  ;;  %2960 = vmatmul.mubr.msk.f32.vlgmr.msra.gmra.mxu0 %vm95_vm0, %v86_v3  ;;  %283 = vperm.xlu0 %3139, %v275_v4   ;;  %v274_v7 = vld [vmem:[%s4101_s26 + $0x8] sm:$0xff]  ;;  %v189_v9 = vld [vmem:[%s4064_s8] sm:$0xff]  ;;  %v74_v10 = vlaneseq  ;;  %vm489_vm1 = vcmask 1041408   ;;  %v3211_v15 = vmov 0.0  }
  0x12   :  { %3140 = vset.pattern.permute.xlu1 %v3210_v5  ;;  %v190_v8 = vld [vmem:[%s4064_s8 + $0x8] sm:$0xff]  ;;  %v3366_v11 = vld [vmem:[%s4065_s9] sm:$0x3]  ;;  %s4102_s8 = sld [smem:[#allocation8_spill]]  ;;  %vm305_vm4 = vcmask 195584   ;;  %vm390_vm5 = vcmask 191488  }
  0x13   :  { %277 = vperm.xlu1 %3140, %v273_v6   ;;  %2962 = vmatprep.subr.mxu0 %v190_v8  ;;  %v3368_v12 = vshrl.u32 %v74_v10, 7  ;;  %v3391_v20 = vand.u32 127, %v74_v10  ;;  %v3212_v22 = vmov 1.0   ;;  %v2779_v23 = vld [vmem:[%s4063_s7] ss:$0 sm:$0xff]  ;;  %vm4083_vm7 = vcmask 130048  }
  0x14   :  { %2963 = vmatpush3.msra.mxu0 %v190_v8  ;;  %2998 = vmatprep.subr.msk.mxu1 %vm489_vm1, %v3366_v11  ;;  %s4103_s25 = sld [smem:[#allocation9_spill]]  ;;  %vm4090_vm12 = vmmov 0   ;;  %vm479_vm13 = vcmask 15360   ;;  %v3471_v46 = vld [vmem:[%s4066_s10] sm:$0x7]  ;;  %vm670_vm14 = vcmask 257024  }
  0x15   :  { %280 = vperm.xlu0 %3139, %v274_v7   ;;  %2964 = vmatprep.subr.mxu0 %v189_v9  ;;  %v3378_v14 = vadd.s32 8, %v3368_v12  ;;  %v3466_v45 = vsub.s32 0, %v3368_v12  ;;  %vm4084_vm15 = vcmask 261120   ;;  %v3490_v58 = vld [vmem:[%s4068_s12] sm:$0x7]  ;;  %vm712_vm0 = vcmask 97280  }
  0x16   :  { %2965 = vmatpush3.msra.mxu0 %v189_v9  ;;  %2999 = vmatpush3.msk.msra.mxu1 %vm489_vm1, %v3366_v11  ;;  %v3495_v61 = vld [vmem:[%s4067_s11] sm:$0x7]  ;;  %s3214_s11 = smov 32   ;;  %s3215_s12 = smov 64  }
  0x17   :  { %v663_v49 = vrot.slane %v3471_v46, %v3466_v45  ;;  %v3499_v63 = vrot.slane %v3490_v58, %v3466_v45  ;;  %v677_v2 = vrot.slane %v3495_v61, %v3466_v45  ;;  %s3216_s0 = smov 96   ;;  %s4104_s9 = sld [smem:[#allocation10_spill]] }
  0x18   :  { %v2789_v13 = vld [vmem:[%s4102_s8] ss:$0 sm:$0xff]  ;;  %s4105_s26 = sld [smem:[#allocation11_spill]] }
  0x19   :  { %vm299_vm2 = vcmp.eq.s32.totalorder %v3368_v12, %v2789_v13  ;;  %vm300_vm3 = vcmp.eq.s32.totalorder %v3378_v14, %v2789_v13 }
  0x1a   :  { %v3383_v16 = vsel %vm299_vm2, 1.0, %v3211_v15  ;;  %v3386_v17 = vsel %vm300_vm3, 1.0, %v3211_v15  ;;  %v396_v40 = vld [vmem:[%s4103_s25 + $0x10] sm:$0xff]  ;;  %v395_v41 = vld [vmem:[%s4103_s25 + $0x8] sm:$0xff]  ;;  %v394_v42 = vld [vmem:[%s4103_s25] sm:$0xff]  ;;  %vm80_vm2 = vcmp.eq.s32.totalorder %v3378_v14, %v3391_v20  ;;  %vm4089_vm3 = vcmask 1043456  }
  0x1b   :  { %v387_v18 = vsel %vm305_vm4, %v3383_v16, 0.0  ;;  %v391_v19 = vsel %vm390_vm5, %v3386_v17, 0.0  ;;  %vm79_vm5 = vcmp.eq.s32.totalorder %v3368_v12, %v3391_v20 }
  0x34   :  { %392 = vadd.xlane.f32.xlu0 %v391_v19 }
  0x37   :  { %388 = vadd.xlane.f32.xlu1 %v387_v18 }
  0x8c   :  { %v3393_v21 = vpop.permute.xlu0 %283 }
  0x8d   :  { %vm287_vm6 = vcmp.eq.s32.totalorder %v3391_v20, %v3393_v21 }
  0x8e   :  { %2969 = vmatprep.subr.msk.mxu0 %vm287_vm6, %v3212_v22  ;;  %v3406_v38 = vpop.permute.xlu1 %277 }
  0x8f   :  { %vm285_vm11 = vcmp.eq.s32.totalorder %v3391_v20, %v3406_v38 }
  0x90   :  { %v3404_v36 = vpop.permute.xlu0 %280  ;;  %v3566_v21 = vsel %vm285_vm11, 1.0, %v3211_v15 }
  0x91   :  { %vm286_vm10 = vcmp.eq.s32.totalorder %v3391_v20, %v3404_v36 }
  0xbd   :  { %v393_v44 = vpop.xlane.xlu0 %392 }
  0xbe   :  { %v473_v48 = vmax.f32 %v393_v44, 1.0 }
  0xc0   :  { %v389_v43 = vpop.xlane.xlu1 %388 }
  0xc1   :  { %v472_v47 = vmax.f32 %v389_v43, 1.0 }
  0xd1   :  { %v2961_v24 = vpop.f32.mrf.mxu0 }
  0xd2   :  { %v174_v25 = vadd.f32 %v2961_v24, %v2779_v23 }
  0xd3   :  { %v168_v26 = vpop.f32.mrf.mxu0 }
  0xd4   :  { %v180_v27 = vmin.f32 %v174_v25, 0.0  ;;  %v169_v28 = vadd.f32 %v2779_v23, %v168_v26  ;;  %vm178_vm9 = vcmp.gt.f32.partialorder %v174_v25, 0.0 }
  0xd6   :  { %v183_v29 = vmul.f32 1.442695, %v180_v27  ;;  %v179_v30 = vmin.f32 %v169_v28, 0.0  ;;  %vm177_vm8 = vcmp.gt.f32.partialorder %v169_v28, 0.0 }
  0xd8   :  { %3142 = vpow2.f32 %v183_v29  ;;  %v181_v31 = vmul.f32 1.442695, %v179_v30  ;;  %v3529_v29 = vsel %vm80_vm2, 1.0, %v3211_v15 }
  0xda   :  { %3144 = vpow2.f32 %v181_v31 }
  0xdb   :  { %3146 = vrcp.f32 %v472_v47 }
  0xdc   :  { %3148 = vrcp.f32 %v473_v48 }
  0xe5   :  { %v3143_v32 = vpop.eup %3142 }
  0xe6   :  { %v2783_v34 = vadd.f32 -1.0, %v3143_v32  ;;  %v3536_v32 = vsel %vm79_vm5, 1.0, %v3211_v15 }
  0xe7   :  { %v3145_v33 = vpop.eup %3144 }
  0xe8   :  { %v2782_v35 = vadd.f32 -1.0, %v3145_v33  ;;  %v188_v39 = vsel %vm178_vm9, %v174_v25, %v2783_v34  ;;  %v3147_v59 = vpop.eup %3146 }
  0xe9   :  { %v3149_v62 = vpop.eup %3148 }
  0xea   :  { %v187_v37 = vsel %vm177_vm8, %v169_v28, %v2782_v35  ;;  %v3552_v35 = vsel %vm287_vm6, 1.0, %v3211_v15 }
  0xeb   :  { %2966 = vmatprep.mubr.msk.f32.mxu0 %vm4083_vm7, %v187_v37 }
  0xec   :  { %2967 = vmatmul.mubr.msk.f32.vlgmr.msra.gmra.mxu0 %vm4083_vm7, %v188_v39  ;;  %vm2111_vm7 = vcmp.lt.s32.totalorder %v3391_v20, %v3368_v12 }
  0xed   :  { %2970 = vmatpush3.msk.msra.mxu0 %vm287_vm6, %v3212_v22  ;;  %2975 = vmatprep.mubr.msk.f32.mxu0 %vm305_vm4, %v3383_v16 }
  0xee   :  { %2971 = vmatprep.subr.msk.mxu0 %vm286_vm10, %v3212_v22 }
  0xef   :  { %2972 = vmatpush3.msk.msra.mxu0 %vm286_vm10, %v3212_v22 }
  0xf0   :  { %2973 = vmatprep.subr.msk.mxu0 %vm285_vm11, %v3212_v22 }
  0xf1   :  { %2974 = vmatpush3.msk.msra.mxu0 %vm285_vm11, %v3212_v22 }
  0xf2   :  { %2976 = vmatmul.mubr.msk.f32.vlgmr.msra.gmra.mxu0 %vm305_vm4, %v3386_v17  ;;  %2978 = vmatprep.subr.mxu0 %v396_v40 }
  0xf3   :  { %2979 = vmatpush3.msra.mxu0 %v396_v40  ;;  %2984 = vmatprep.mubr.msk.f32.mxu0 %vm305_vm4, %v3383_v16 }
  0xf4   :  { %2980 = vmatprep.subr.mxu0 %v395_v41 }
  0xf5   :  { %2981 = vmatpush3.msra.mxu0 %v395_v41 }
  0xf6   :  { %2982 = vmatprep.subr.mxu0 %v394_v42 }
  0xf7   :  { %2983 = vmatpush3.msra.mxu0 %v394_v42 }
  0xf8   :  { %2985 = vmatmul.mubr.msk.f32.vlgmr.msra.gmra.mxu0 %vm305_vm4, %v3386_v17  ;;  %2987 = vmatprep.subr.mxu0 %v3211_v15 }
  0xf9   :  { %2988 = vmatpush3.msk.msra.mxu0 %vm489_vm1, %v3366_v11  ;;  %2989 = vmatprep.mubr.msk.f32.mxu0 %vm4090_vm12, %v3211_v15 }
  0xfc   :  { %2990 = vmatmul.mubr.msk.f32.vlgmr.msra.gmra.mxu0 %vm479_vm13, %v394_v42 }
  0xfd   :  { %2992 = vmatprep.mubr.msk.f32.mxu0 %vm4090_vm12, %v3211_v15 }
 0x100   :  { %2993 = vmatmul.mubr.msk.f32.gmra.mxu0 %vm479_vm13, %v395_v41  ;;  %v3559_v41 = vsel %vm286_vm10, 1.0, %v3211_v15  ;;  %vm894_vm10 = vcmask 93184  }
 0x101   :  { %2995 = vmatprep.mubr.msk.f32.mxu0 %vm4090_vm12, %v3211_v15 }
 0x104   :  { %2996 = vmatmul.mubr.msk.f32.gmra.mxu0 %vm479_vm13, %v396_v40 }
 0x105   :  { %3016 = vmatprep.mubr.msk.f32.mxu0 %vm305_vm4, %v3383_v16 }
 0x1ac   :  { %v3475_v50 = vpop.f32.mrf.mxu0 }
 0x1ad   :  { %v665_v51 = vmul.f32 %v3475_v50, %v663_v49  ;;  %v679_v9 = vmul.f32 %v3475_v50, %v677_v2 }
 0x1ae   :  { %v3478_v52 = vpop.f32.mrf.mxu0 }
 0x1af   :  { %v671_v53 = vsel %vm670_vm14, %v665_v51, 0.0  ;;  %v664_v54 = vmul.f32 %v663_v49, %v3478_v52  ;;  %v683_v13 = vsel %vm670_vm14, %v679_v9, 0.0  ;;  %v678_v27 = vmul.f32 %v677_v2, %v3478_v52 }
 0x1b0   :  { %672 = vadd.xlane.f32.xlu0 %v671_v53  ;;  %v3584_v53 = vsub.s32 1, %v3368_v12 }
 0x1b1   :  { %v667_v56 = vsel %vm4084_vm15, %v664_v54, 0.0  ;;  %v680_v28 = vsel %vm4084_vm15, %v678_v27, 0.0  ;;  %v3587_v54 = vsub.s32 2, %v3368_v12 }
 0x1b2   :  { %v3482_v55 = vpop.f32.mrf.mxu0 }
 0x1b4   :  { %668 = vadd.xlane.f32.xlu0 %v667_v56  ;;  %v3485_v57 = vpop.f32.mrf.mxu0  ;;  %v1057_v56 = vrot.slane %v3490_v58, %v3584_v53 }
 0x1b8   :  { %v2986_v60 = vpop.f32.mrf.mxu0 }
 0x1b9   :  { %v477_v3 = vmul.f32 %v3149_v62, %v2986_v60  ;;  %v1009_v60 = vrot.slane %v3471_v46, %v3584_v53  ;;  %v1443_v62 = vrot.slane %v3490_v58, %v3587_v54 }
 0x1ba   :  { %v463_v0 = vpop.f32.mrf.mxu0 }
 0x1bb   :  { %v475_v1 = vmul.f32 %v3147_v59, %v463_v0  ;;  %v1395_v59 = vrot.slane %v3471_v46, %v3587_v54 }
 0x1bc   :  { %v3503_v4 = vpop.f32.mrf.mxu0 }
 0x1bd   :  { %3000 = vmatprep.mubr.msk.f32.mxu1 %vm479_vm13, %v475_v1  ;;  %v690_v6 = vmul.f32 %v3499_v63, %v3503_v4 }
 0x1be   :  { %v2991_v7 = vpop.f32.mrf.mxu0  ;;  %3001 = vmatmul.mubr.msk.f32.vlgmr.msra.gmra.mxu1 %vm479_vm13, %v477_v3 }
 0x1bf   :  { %v693_v8 = vsel %vm4084_vm15, %v690_v6, 0.0  ;;  %3007 = vmatprep.mubr.msk.f32.mxu1 %vm712_vm0, %v3212_v22 }
 0x1c0   :  { %694 = vadd.xlane.f32.xlu0 %v693_v8  ;;  %v3513_v10 = vpop.f32.mrf.mxu0 }
 0x1c1   :  { %v691_v25 = vmul.f32 %v3499_v63, %v3513_v10 }
 0x1c2   :  { %v2994_v11 = vpop.f32.mrf.mxu0 }
 0x1c3   :  { %v696_v26 = vsel %vm4084_vm15, %v691_v25, 0.0  ;;  %v3609_v25 = vadd.f32 %v3536_v32, %v3485_v57 }
 0x1c4   :  { %684 = vadd.xlane.f32.xlu0 %v683_v13  ;;  %v3516_v18 = vpop.f32.mrf.mxu0 }
 0x1c5   :  { %v692_v19 = vmul.f32 %v3499_v63, %v3516_v18  ;;  %vm887_vm11 = vcmp.gt.f32.partialorder %v3609_v25, 0.0 }
 0x1c6   :  { %v2997_v23 = vpop.f32.mrf.mxu0 }
 0x1c7   :  { %v699_v24 = vsel %vm4084_vm15, %v692_v19, 0.0  ;;  %v3604_v19 = vadd.f32 %v3482_v55, %v3529_v29 }
 0x1c8   :  { %700 = vadd.xlane.f32.xlu1 %v699_v24 }
 0x1c9   :  { %vm888_vm8 = vcmp.gt.f32.partialorder %v3604_v19, 0.0 }
 0x1cc   :  { %697 = vadd.xlane.f32.xlu1 %v696_v26 }
 0x1d0   :  { %681 = vadd.xlane.f32.xlu1 %v680_v28 }
 0x239   :  { %v673_v30 = vpop.xlane.xlu0 %672 }
 0x23a   :  { %v711_v31 = vmul.f32 %v3529_v29, %v673_v30 }
 0x23c   :  { %3003 = vmatprep.subr.msk.mxu1 %vm4089_vm3, %v711_v31 }
 0x23d   :  { %v669_v33 = vpop.xlane.xlu0 %668  ;;  %3004 = vmatpush3.msk.msra.mxu1 %vm4089_vm3, %v711_v31 }
 0x23e   :  { %v710_v34 = vmul.f32 %v3536_v32, %v669_v33 }
 0x240   :  { %3005 = vmatprep.subr.mxu1 %v710_v34 }
 0x241   :  { %3006 = vmatpush3.msra.mxu1 %v710_v34 }
 0x242   :  { %3008 = vmatmul.mubr.msk.f32.vlgmr.msra.gmra.mxu1 %vm712_vm0, %v3212_v22  ;;  %3019 = vmatprep.subr.msk.mxu1 %vm4089_vm3, %v3475_v50 }
 0x243   :  { %3020 = vmatpush3.msk.msra.mxu1 %vm4089_vm3, %v3475_v50 }
 0x244   :  { %3021 = vmatprep.subr.mxu1 %v3478_v52 }
 0x245   :  { %3022 = vmatpush3.msra.mxu1 %v3478_v52 }
 0x249   :  { %v695_v40 = vpop.xlane.xlu0 %694 }
 0x24a   :  { %v797_v44 = vmul.f32 %v3566_v21, %v695_v40 }
 0x251   :  { %v701_v37 = vpop.xlane.xlu1 %700 }
 0x252   :  { %v799_v39 = vmul.f32 %v3552_v35, %v701_v37 }
 0x254   :  { %3010 = vmatprep.subr.mxu0 %v799_v39 }
 0x255   :  { %3011 = vmatpush3.msra.mxu0 %v799_v39  ;;  %v698_v42 = vpop.xlane.xlu1 %697 }
 0x256   :  { %v798_v43 = vmul.f32 %v3559_v41, %v698_v42 }
 0x258   :  { %3012 = vmatprep.subr.mxu0 %v798_v43 }
 0x259   :  { %3013 = vmatpush3.msra.mxu0 %v798_v43  ;;  %v682_v1 = vpop.xlane.xlu1 %681 }
 0x25a   :  { %3014 = vmatprep.subr.mxu0 %v797_v44 }
 0x25b   :  { %3015 = vmatpush3.msra.mxu0 %v797_v44 }
 0x25c   :  { %3017 = vmatmul.mubr.msk.f32.vlgmr.msra.gmra.mxu0 %vm305_vm4, %v3386_v17 }
 0x25d   :  { %3039 = vmatprep.mubr.msk.f32.mxu0 %vm305_vm4, %v3383_v16 }
 0x27e   :  { %v3573_v36 = vpop.f32.mrf.mxu1 }
 0x27f   :  { %v703_v47 = vmul.f32 %v3573_v36, %v3499_v63 }
 0x280   :  { %v3577_v38 = vpop.f32.mrf.mxu1 }
 0x281   :  { %v707_v48 = vsel %vm670_vm14, %v703_v47, 0.0  ;;  %v702_v49 = vmul.f32 %v3499_v63, %v3577_v38  ;;  %v685_v63 = vpop.xlane.xlu0 %684 }
 0x282   :  { %708 = vadd.xlane.f32.xlu0 %v707_v48 }
 0x283   :  { %v704_v51 = vsel %vm4084_vm15, %v702_v49, 0.0 }
 0x284   :  { %705 = vadd.xlane.f32.xlu1 %v704_v51 }
 0x295   :  { %1059 = vrot.lane.b32.xlu1 %v1057_v56, %s3214_s11 }
 0x298   :  { %1397 = vrot.lane.b32.xlu0 %v1395_v59, %s3215_s12 }
 0x299   :  { %1011 = vrot.lane.b32.xlu1 %v1009_v60, %s3214_s11 }
 0x29d   :  { %1445 = vrot.lane.b32.xlu1 %v1443_v62, %s3215_s12 }
 0x302   :  { %v3009_v0 = vpop.f32.mrf.mxu1 }
 0x303   :  { %v796_v6 = vadd.f32 %v3009_v0, %v685_v63 }
 0x304   :  { %v786_v2 = vpop.f32.mrf.mxu1 }
 0x305   :  { %v795_v9 = vadd.f32 %v786_v2, %v682_v1 }
 0x30b   :  { %v709_v3 = vpop.xlane.xlu0 %708 }
 0x30c   :  { %v878_v46 = vmul.f32 %v3529_v29, %v709_v3 }
 0x30d   :  { %v706_v7 = vpop.xlane.xlu1 %705 }
 0x30e   :  { %v877_v58 = vmul.f32 %v3536_v32, %v706_v7 }
 0x30f   :  { %v1398_v43 = vpop.permute.xlu0 %1397 }
 0x310   :  { %v1401_v44 = vmul.f32 %v3475_v50, %v1398_v43  ;;  %v1400_v60 = vmul.f32 %v1398_v43, %v3478_v52 }
 0x311   :  { %v3619_v40 = vpop.permute.xlu1 %1059 }
 0x312   :  { %v1063_v42 = vmul.f32 %v3619_v40, %v3513_v10  ;;  %v1064_v48 = vmul.f32 %v3619_v40, %v3516_v18  ;;  %v1062_v51 = vmul.f32 %v3619_v40, %v3503_v4 }
 0x315   :  { %v1012_v47 = vpop.permute.xlu1 %1011 }
 0x316   :  { %v1015_v49 = vmul.f32 %v3475_v50, %v1012_v47  ;;  %v1014_v56 = vmul.f32 %v1012_v47, %v3478_v52 }
 0x319   :  { %v3634_v59 = vpop.permute.xlu1 %1445 }
 0x31a   :  { %v1448_v62 = vmul.f32 %v3634_v59, %v3503_v4  ;;  %v1450_v63 = vmul.f32 %v3634_v59, %v3516_v18  ;;  %v1449_v0 = vmul.f32 %v3634_v59, %v3513_v10 }
 0x31c   :  { %v3018_v8 = vpop.f32.mrf.mxu0 }
 0x31d   :  { %v876_v11 = vadd.f32 %v3018_v8, %v796_v6 }
 0x31e   :  { %v866_v13 = vpop.f32.mrf.mxu0 }
 0x31f   :  { %v880_v23 = vadd.f32 %v878_v46, %v876_v11  ;;  %v875_v24 = vadd.f32 %v866_v13, %v795_v9 }
 0x321   :  { %v879_v26 = vadd.f32 %v877_v58, %v875_v24  ;;  %vm882_vm6 = vcmp.gt.f32.partialorder %v880_v23, 0.0  ;;  %v884_v27 = vmul.f32 0.2, %v880_v23 }
 0x323   :  { %v886_v28 = vsel %vm882_vm6, %v880_v23, %v884_v27  ;;  %vm881_vm9 = vcmp.gt.f32.partialorder %v879_v26, 0.0  ;;  %v883_v30 = vmul.f32 0.2, %v879_v26  ;;  %vm4085_vm6 = vcmask 523264  }
 0x324   :  { %v890_v31 = vsel %vm888_vm8, %v886_v28, -1e+30 }
 0x325   :  { %v895_v33 = vsel %vm894_vm10, %v890_v31, -inf  ;;  %v885_v34 = vsel %vm881_vm9, %v879_v26, %v883_v30  ;;  %vm4086_vm9 = vcmask 785408  }
 0x326   :  { %896 = vmax.xlane.f32.xlu1 %v895_v33  ;;  %v889_v37 = vsel %vm887_vm11, %v885_v34, -1e+30 }
 0x327   :  { %v891_v39 = vsel %vm712_vm0, %v889_v37, -inf }
 0x328   :  { %892 = vmax.xlane.f32.xlu0 %v891_v39 }
 0x337   :  { %1070 = vrot.lane.b32.xlu1 %v1063_v42, %s3216_s0 }
 0x33b   :  { %1406 = vrot.lane.b32.xlu1 %v1401_v44, %s3215_s12 }
 0x33e   :  { %1072 = vrot.lane.b32.xlu0 %v1064_v48, %s3216_s0 }
 0x33f   :  { %1020 = vrot.lane.b32.xlu1 %v1015_v49, %s3216_s0  ;;  %v1033_v49 = vrot.slane %v3495_v61, %v3584_v53 }
 0x342   :  { %1068 = vrot.lane.b32.xlu0 %v1062_v51, %s3216_s0  ;;  %v1419_v51 = vrot.slane %v3495_v61, %v3587_v54 }
 0x343   :  { %1018 = vrot.lane.b32.xlu1 %v1014_v56, %s3216_s0 }
 0x346   :  { %1404 = vrot.lane.b32.xlu0 %v1400_v60, %s3215_s12 }
 0x347   :  { %1454 = vrot.lane.b32.xlu1 %v1448_v62, %s3215_s12 }
 0x34a   :  { %1458 = vrot.lane.b32.xlu0 %v1450_v63, %s3215_s12 }
 0x34e   :  { %1456 = vrot.lane.b32.xlu0 %v1449_v0, %s3215_s12 }
 0x3af   :  { %v897_v1 = vpop.xlane.xlu1 %896 }
 0x3b0   :  { %v899_v2 = vsub.f32 %v890_v31, %v897_v1 }
 0x3b1   :  { %v893_v3 = vpop.xlane.xlu0 %892 }
 0x3b2   :  { %v902_v6 = vmul.f32 1.442695, %v899_v2  ;;  %v898_v7 = vsub.f32 %v889_v37, %v893_v3 }
 0x3b3   :  { %v1071_v18 = vpop.permute.xlu1 %1070 }
 0x3b4   :  { %3150 = vpow2.f32 %v902_v6  ;;  %v900_v4 = vmul.f32 1.442695, %v898_v7  ;;  %v1080_v27 = vsel %vm4084_vm15, %v1071_v18, 0.0 }
 0x3b5   :  { %v1073_v8 = vpop.permute.xlu0 %1072 }
 0x3b6   :  { %3152 = vpow2.f32 %v900_v4  ;;  %v1083_v9 = vsel %vm4084_vm15, %v1073_v8, 0.0 }
 0x3b7   :  { %1084 = vadd.xlane.f32.xlu0 %v1083_v9  ;;  %v1407_v58 = vpop.permute.xlu1 %1406 }
 0x3b8   :  { %v1413_v33 = vsel %vm670_vm14, %v1407_v58, 0.0 }
 0x3b9   :  { %v1069_v46 = vpop.permute.xlu0 %1068 }
 0x3ba   :  { %v1077_v26 = vsel %vm4084_vm15, %v1069_v46, 0.0 }
 0x3bb   :  { %v1021_v28 = vpop.permute.xlu1 %1020 }
 0x3bc   :  { %v1027_v42 = vsel %vm670_vm14, %v1021_v28, 0.0 }
 0x3bd   :  { %v1405_v23 = vpop.permute.xlu0 %1404 }
 0x3be   :  { %v1410_v31 = vsel %vm4084_vm15, %v1405_v23, 0.0 }
 0x3bf   :  { %v1019_v37 = vpop.permute.xlu1 %1018 }
 0x3c0   :  { %v1024_v44 = vsel %vm4084_vm15, %v1019_v37, 0.0 }
 0x3c1   :  { %v3650_v11 = vpop.eup %3150  ;;  %v1459_v30 = vpop.permute.xlu0 %1458 }
 0x3c2   :  { %v907_v10 = vsel %vm894_vm10, %v3650_v11, 0.0  ;;  %v1469_v34 = vsel %vm4084_vm15, %v1459_v30, 0.0 }
 0x3c3   :  { %v3654_v13 = vpop.eup %3152  ;;  %908 = vadd.xlane.f32.xlu1 %v907_v10  ;;  %v1455_v47 = vpop.permute.xlu1 %1454 }
 0x3c4   :  { %v904_v24 = vsel %vm712_vm0, %v3654_v13, 0.0  ;;  %v1463_v48 = vsel %vm4084_vm15, %v1455_v47, 0.0 }
 0x3c5   :  { %905 = vadd.xlane.f32.xlu0 %v904_v24  ;;  %v1457_v39 = vpop.permute.xlu0 %1456 }
 0x3c6   :  { %v1466_v43 = vsel %vm4084_vm15, %v1457_v39, 0.0 }
 0x3c7   :  { %1078 = vadd.xlane.f32.xlu1 %v1077_v26 }
 0x3c9   :  { %1081 = vadd.xlane.f32.xlu0 %v1080_v27 }
 0x3cb   :  { %1411 = vadd.xlane.f32.xlu1 %v1410_v31 }
 0x3cd   :  { %1414 = vadd.xlane.f32.xlu0 %v1413_v33 }
 0x3cf   :  { %1470 = vadd.xlane.f32.xlu1 %v1469_v34  ;;  %v1472_v34 = vmul.f32 %v3634_v59, %v3577_v38 }
 0x3d1   :  { %1028 = vadd.xlane.f32.xlu0 %v1027_v42 }
 0x3d3   :  { %1467 = vadd.xlane.f32.xlu1 %v1466_v43 }
 0x3d5   :  { %1025 = vadd.xlane.f32.xlu0 %v1024_v44 }
 0x3d9   :  { %1464 = vadd.xlane.f32.xlu0 %v1463_v48 }
 0x3e4   :  { %1035 = vrot.lane.b32.xlu1 %v1033_v49, %s3214_s11 }
 0x3ef   :  { %1421 = vrot.lane.b32.xlu0 %v1419_v51, %s3215_s12 }
 0x440   :  { %v1085_v56 = vpop.xlane.xlu0 %1084 }
 0x441   :  { %v1186_v60 = vmul.f32 %v3552_v35, %v1085_v56 }
 0x443   :  { %3033 = vmatprep.subr.mxu0 %v1186_v60 }
 0x444   :  { %3034 = vmatpush3.msra.mxu0 %v1186_v60 }
 0x44c   :  { %v909_v62 = vpop.xlane.xlu1 %908 }
 0x44d   :  { %3154 = vrcp.f32 %v909_v62 }
 0x44e   :  { %v906_v63 = vpop.xlane.xlu0 %905 }
 0x44f   :  { %3156 = vrcp.f32 %v906_v63 }
 0x450   :  { %v1079_v0 = vpop.xlane.xlu1 %1078 }
 0x451   :  { %v1184_v3 = vmul.f32 %v3566_v21, %v1079_v0 }
 0x452   :  { %v1082_v1 = vpop.xlane.xlu0 %1081 }
 0x453   :  { %v1185_v53 = vmul.f32 %v3559_v41, %v1082_v1 }
 0x454   :  { %v1412_v2 = vpop.xlane.xlu1 %1411 }
 0x455   :  { %3035 = vmatprep.subr.mxu0 %v1185_v53  ;;  %v1488_v7 = vmul.f32 %v3536_v32, %v1412_v2 }
 0x456   :  { %3036 = vmatpush3.msra.mxu0 %v1185_v53  ;;  %v1415_v61 = vpop.xlane.xlu0 %1414 }
 0x457   :  { %v1489_v54 = vmul.f32 %v3529_v29, %v1415_v61  ;;  %3037 = vmatprep.subr.mxu0 %v1184_v3 }
 0x458   :  { %3038 = vmatpush3.msra.mxu0 %v1184_v3  ;;  %v1471_v6 = vpop.xlane.xlu1 %1470 }
 0x459   :  { %3049 = vmatprep.subr.msk.mxu0 %vm4089_vm3, %v1489_v54  ;;  %3040 = vmatmul.mubr.msk.f32.vlgmr.msra.gmra.mxu0 %vm305_vm4, %v3386_v17  ;;  %v1572_v9 = vmul.f32 %v3552_v35, %v1471_v6 }
 0x45a   :  { %v1029_v4 = vpop.xlane.xlu0 %1028  ;;  %3050 = vmatpush3.msk.msra.mxu0 %vm4089_vm3, %v1489_v54  ;;  %3053 = vmatprep.mubr.msk.f32.mxu0 %vm712_vm0, %v3212_v22  ;;  %v3155_v8 = vpop.eup %3154 }
 0x45b   :  { %v1103_v18 = vmul.f32 %v3529_v29, %v1029_v4  ;;  %3051 = vmatprep.subr.mxu0 %v1488_v7  ;;  %v913_v26 = vmul.f32 %v3155_v8, %v3650_v11 }
 0x45c   :  { %v3157_v46 = vpop.eup %3156  ;;  %3052 = vmatpush3.msra.mxu0 %v1488_v7  ;;  %v1468_v10 = vpop.xlane.xlu1 %1467 }
 0x45d   :  { %v1571_v58 = vmul.f32 %v3559_v41, %v1468_v10  ;;  %3026 = vmatprep.subr.msk.mxu1 %vm4089_vm3, %v1103_v18  ;;  %3056 = vmatprep.subr.mxu0 %v1572_v9  ;;  %v912_v23 = vmul.f32 %v3157_v46, %v3654_v13 }
 0x45e   :  { %v1026_v24 = vpop.xlane.xlu0 %1025  ;;  %3054 = vmatmul.mubr.msk.f32.vlgmr.msra.gmra.mxu0 %vm712_vm0, %v3212_v22 }
 0x45f   :  { %v1102_v35 = vmul.f32 %v3536_v32, %v1026_v24  ;;  %3057 = vmatpush3.msra.mxu0 %v1572_v9  ;;  %3023 = vmatprep.mubr.msk.f32.mxu1 %vm712_vm0, %v912_v23 }
 0x460   :  { %3058 = vmatprep.subr.mxu0 %v1571_v58  ;;  %3024 = vmatmul.mubr.msk.f32.vlgmr.msra.gmra.mxu1 %vm712_vm0, %v913_v26  ;;  %v1036_v41 = vpop.permute.xlu1 %1035 }
 0x461   :  { %3027 = vmatpush3.msk.msra.mxu1 %vm4089_vm3, %v1103_v18  ;;  %3059 = vmatpush3.msra.mxu0 %v1571_v58  ;;  %v1038_v13 = vmul.f32 %v1036_v41, %v3478_v52  ;;  %v1039_v28 = vmul.f32 %v3475_v50, %v1036_v41 }
 0x462   :  { %3028 = vmatprep.subr.mxu1 %v1102_v35  ;;  %v1465_v27 = vpop.xlane.xlu0 %1464  ;;  %3030 = vmatprep.mubr.msk.f32.mxu1 %vm712_vm0, %v3212_v22 }
 0x463   :  { %v1570_v11 = vmul.f32 %v3566_v21, %v1465_v27  ;;  %3029 = vmatpush3.msra.mxu1 %v1102_v35  ;;  %1042 = vrot.lane.b32.xlu1 %v1038_v13, %s3216_s0  ;;  %v1086_v21 = vmul.f32 %v3619_v40, %v3577_v38 }
 0x464   :  { %3031 = vmatmul.mubr.msk.f32.vlgmr.msra.gmra.mxu1 %vm712_vm0, %v3212_v22  ;;  %3062 = vmatprep.mubr.msk.f32.mxu0 %vm305_vm4, %v3383_v16  ;;  %v1087_v16 = vmul.f32 %v3573_v36, %v3619_v40 }
 0x465   :  { %3060 = vmatprep.subr.mxu0 %v1570_v11 }
 0x466   :  { %v1422_v30 = vpop.permute.xlu0 %1421  ;;  %3061 = vmatpush3.msra.mxu0 %v1570_v11 }
 0x467   :  { %v1424_v31 = vmul.f32 %v1422_v30, %v3478_v52  ;;  %1044 = vrot.lane.b32.xlu1 %v1039_v28, %s3216_s0  ;;  %3063 = vmatmul.mubr.msk.f32.vlgmr.msra.gmra.mxu0 %vm305_vm4, %v3386_v17  ;;  %v1425_v33 = vmul.f32 %v3475_v50, %v1422_v30  ;;  %v1473_v17 = vmul.f32 %v3573_v36, %v3634_v59 }
 0x469   :  { %1428 = vrot.lane.b32.xlu0 %v1424_v31, %s3215_s12 }
 0x46b   :  { %1090 = vrot.lane.b32.xlu1 %v1086_v21, %s3216_s0 }
 0x46d   :  { %1430 = vrot.lane.b32.xlu0 %v1425_v33, %s3215_s12 }
 0x46f   :  { %1092 = vrot.lane.b32.xlu1 %v1087_v16, %s3216_s0 }
 0x471   :  { %1476 = vrot.lane.b32.xlu0 %v1472_v34, %s3215_s12 }
 0x473   :  { %1478 = vrot.lane.b32.xlu1 %v1473_v17, %s3215_s12 }
 0x4d5   :  { %v1043_v37 = vpop.permute.xlu1 %1042 }
 0x4d6   :  { %v1048_v39 = vsel %vm4084_vm15, %v1043_v37, 0.0 }
 0x4d7   :  { %1049 = vadd.xlane.f32.xlu0 %v1048_v39 }
 0x4d9   :  { %v1045_v42 = vpop.permute.xlu1 %1044 }
 0x4da   :  { %v1051_v43 = vsel %vm670_vm14, %v1045_v42, 0.0 }
 0x4db   :  { %v1429_v40 = vpop.permute.xlu0 %1428  ;;  %1052 = vadd.xlane.f32.xlu1 %v1051_v43 }
 0x4dc   :  { %v1434_v44 = vsel %vm4084_vm15, %v1429_v40, 0.0 }
 0x4dd   :  { %1435 = vadd.xlane.f32.xlu0 %v1434_v44  ;;  %v1091_v38 = vpop.permute.xlu1 %1090 }
 0x4de   :  { %v1096_v36 = vsel %vm4084_vm15, %v1091_v38, 0.0 }
 0x4df   :  { %v1431_v47 = vpop.permute.xlu0 %1430 }
 0x4e0   :  { %v1437_v48 = vsel %vm670_vm14, %v1431_v47, 0.0 }
 0x4e1   :  { %1438 = vadd.xlane.f32.xlu1 %v1437_v48  ;;  %1097 = vadd.xlane.f32.xlu0 %v1096_v36  ;;  %v1093_v59 = vpop.permute.xlu1 %1092 }
 0x4e2   :  { %v1099_v56 = vsel %vm670_vm14, %v1093_v59, 0.0 }
 0x4e3   :  { %v1477_v49 = vpop.permute.xlu0 %1476 }
 0x4e4   :  { %v1482_v51 = vsel %vm4084_vm15, %v1477_v49, 0.0 }
 0x4e5   :  { %1483 = vadd.xlane.f32.xlu1 %v1482_v51  ;;  %1100 = vadd.xlane.f32.xlu0 %v1099_v56  ;;  %v1479_v60 = vpop.permute.xlu1 %1478 }
 0x4e6   :  { %v1485_v62 = vsel %vm670_vm14, %v1479_v60, 0.0 }
 0x4e9   :  { %1486 = vadd.xlane.f32.xlu0 %v1485_v62 }
 0x519   :  { %v3041_v63 = vpop.f32.mrf.mxu0 }
 0x51b   :  { %v1253_v1 = vpop.f32.mrf.mxu0 }
 0x51e   :  { %v3055_v2 = vpop.f32.mrf.mxu0 }
 0x520   :  { %v3733_v0 = vpop.f32.mrf.mxu1  ;;  %v1559_v54 = vpop.f32.mrf.mxu0 }
 0x522   :  { %v3735_v53 = vpop.f32.mrf.mxu1 }
 0x524   :  { %v3032_v3 = vpop.f32.mrf.mxu1 }
 0x526   :  { %v1173_v6 = vpop.f32.mrf.mxu1 }
 0x527   :  { %v3064_v9 = vpop.f32.mrf.mxu0 }
 0x529   :  { %v1639_v24 = vpop.f32.mrf.mxu0 }
 0x560   :  { %v1050_v61 = vpop.xlane.xlu0 %1049 }
 0x561   :  { %v1182_v8 = vadd.f32 %v1173_v6, %v1050_v61 }
 0x563   :  { %v1262_v23 = vadd.f32 %v1253_v1, %v1182_v8 }
 0x564   :  { %v1053_v7 = vpop.xlane.xlu1 %1052 }
 0x565   :  { %v1183_v18 = vadd.f32 %v3032_v3, %v1053_v7 }
 0x566   :  { %v1436_v4 = vpop.xlane.xlu0 %1435 }
 0x567   :  { %v1568_v46 = vadd.f32 %v1559_v54, %v1436_v4  ;;  %v1263_v41 = vadd.f32 %v3041_v63, %v1183_v18 }
 0x569   :  { %v1648_v13 = vadd.f32 %v1639_v24, %v1568_v46 }
 0x56a   :  { %v1098_v10 = vpop.xlane.xlu0 %1097  ;;  %v1439_v58 = vpop.xlane.xlu1 %1438 }
 0x56b   :  { %v1264_v26 = vmul.f32 %v3536_v32, %v1098_v10  ;;  %v1569_v27 = vadd.f32 %v3055_v2, %v1439_v58 }
 0x56d   :  { %v1266_v35 = vadd.f32 %v1264_v26, %v1262_v23  ;;  %v1649_v17 = vadd.f32 %v3064_v9, %v1569_v27  ;;  %v1799_v26 = vmin.f32 %v3482_v55, 1.0  ;;  %v1798_v55 = vmin.f32 %v3485_v57, 1.0 }
 0x56e   :  { %v1101_v11 = vpop.xlane.xlu0 %1100  ;;  %v1484_v28 = vpop.xlane.xlu1 %1483 }
 0x56f   :  { %v1265_v30 = vmul.f32 %v3529_v29, %v1101_v11  ;;  %v1650_v31 = vmul.f32 %v3536_v32, %v1484_v28  ;;  %vm1268_vm4 = vcmp.gt.f32.partialorder %v1266_v35, 0.0  ;;  %v1270_v21 = vmul.f32 0.2, %v1266_v35 }
 0x570   :  { %v3780_v11 = vadd.f32 %v3536_v32, %v1798_v55 }
 0x571   :  { %v1267_v33 = vadd.f32 %v1265_v30, %v1263_v41  ;;  %v1652_v16 = vadd.f32 %v1650_v31, %v1648_v13  ;;  %v1272_v34 = vsel %vm1268_vm4, %v1266_v35, %v1270_v21  ;;  %v3764_v41 = vadd.f32 %v3529_v29, %v1799_v26 }
 0x572   :  { %v1487_v37 = vpop.xlane.xlu0 %1486  ;;  %v1274_v39 = vsel %vm887_vm11, %v1272_v34, -1e+30  ;;  %v1802_v28 = vsel %vm712_vm0, %v3780_v11, 0.0  ;;  %vm4088_vm4 = vcmask 91136  }
 0x573   :  { %v1651_v42 = vmul.f32 %v3529_v29, %v1487_v37  ;;  %v1276_v43 = vsel %vm712_vm0, %v1274_v39, -inf  ;;  %vm1269_vm14 = vcmp.gt.f32.partialorder %v1267_v33, 0.0  ;;  %v1271_v40 = vmul.f32 0.2, %v1267_v33 }
 0x574   :  { %1277 = vmax.xlane.f32.xlu1 %v1276_v43  ;;  %vm1654_vm2 = vcmp.gt.f32.partialorder %v1652_v16, 0.0  ;;  %v1656_v44 = vmul.f32 0.2, %v1652_v16  ;;  %v1805_v27 = vsel %vm894_vm10, %v3764_v41, 0.0 }
 0x575   :  { %v1653_v38 = vadd.f32 %v1651_v42, %v1649_v17  ;;  %v1273_v47 = vsel %vm1269_vm14, %v1267_v33, %v1271_v40 }
 0x576   :  { %v1275_v48 = vsel %vm888_vm8, %v1273_v47, -1e+30  ;;  %v1658_v36 = vsel %vm1654_vm2, %v1652_v16, %v1656_v44 }
 0x577   :  { %v1279_v59 = vsel %vm894_vm10, %v1275_v48, -inf  ;;  %v1660_v49 = vsel %vm887_vm11, %v1658_v36, -1e+30  ;;  %vm1655_vm5 = vcmp.gt.f32.partialorder %v1653_v38, 0.0  ;;  %v1657_v51 = vmul.f32 0.2, %v1653_v38 }
 0x578   :  { %1280 = vmax.xlane.f32.xlu0 %v1279_v59  ;;  %v1662_v56 = vsel %vm712_vm0, %v1660_v49, -inf }
 0x579   :  { %1663 = vmax.xlane.f32.xlu1 %v1662_v56  ;;  %v1659_v60 = vsel %vm1655_vm5, %v1653_v38, %v1657_v51  ;;  %vm2112_vm5 = vcmp.lt.s32.totalorder %v3391_v20, %v3378_v14 }
 0x57a   :  { %v1661_v62 = vsel %vm888_vm8, %v1659_v60, -1e+30  ;;  %vm4087_vm8 = vcmask 781312  }
 0x57b   :  { %v1665_v63 = vsel %vm894_vm10, %v1661_v62, -inf }
 0x57c   :  { %1666 = vmax.xlane.f32.xlu0 %v1665_v63 }
 0x5fd   :  { %v1278_v1 = vpop.xlane.xlu1 %1277 }
 0x5fe   :  { %v1282_v23 = vsub.f32 %v1274_v39, %v1278_v1 }
 0x600   :  { %v1284_v24 = vmul.f32 1.442695, %v1282_v23 }
 0x601   :  { %v1281_v2 = vpop.xlane.xlu0 %1280 }
 0x602   :  { %v1664_v3 = vpop.xlane.xlu1 %1663  ;;  %v1283_v54 = vsub.f32 %v1275_v48, %v1281_v2 }
 0x603   :  { %v1668_v61 = vsub.f32 %v1660_v49, %v1664_v3 }
 0x604   :  { %v1286_v4 = vmul.f32 1.442695, %v1283_v54 }
 0x605   :  { %v1670_v25 = vmul.f32 1.442695, %v1668_v61  ;;  %v1667_v6 = vpop.xlane.xlu0 %1666 }
 0x606   :  { %v1669_v7 = vsub.f32 %v1661_v62, %v1667_v6 }
 0x607   :  { %3158 = vpow2.f32 %v1670_v25 }
 0x608   :  { %v1672_v8 = vmul.f32 1.442695, %v1669_v7 }
 0x60a   :  { %3160 = vpow2.f32 %v1672_v8 }
 0x60b   :  { %3162 = vpow2.f32 %v1286_v4 }
 0x60c   :  { %3164 = vpow2.f32 %v1284_v24 }
 0x614   :  { %v3159_v9 = vpop.eup %3158 }
 0x615   :  { %v1674_v19 = vsel %vm712_vm0, %v3159_v9, 0.0 }
 0x616   :  { %1675 = vadd.xlane.f32.xlu1 %v1674_v19 }
 0x617   :  { %v3161_v18 = vpop.eup %3160 }
 0x618   :  { %v1677_v46 = vsel %vm894_vm10, %v3161_v18, 0.0  ;;  %v3163_v10 = vpop.eup %3162 }
 0x619   :  { %1678 = vadd.xlane.f32.xlu0 %v1677_v46  ;;  %v1291_v58 = vsel %vm894_vm10, %v3163_v10, 0.0  ;;  %v3165_v35 = vpop.eup %3164 }
 0x61a   :  { %v1288_v13 = vsel %vm712_vm0, %v3165_v35, 0.0 }
 0x61d   :  { %1292 = vadd.xlane.f32.xlu0 %v1291_v58 }
 0x627   :  { %1301 = vrot.lane.b32.xlu1 %v3475_v50, %s3216_s0 }
 0x62b   :  { %1299 = vrot.lane.b32.xlu1 %v3478_v52, %s3216_s0 }
 0x633   :  { %1686 = vrot.lane.b32.xlu0 %v3475_v50, %s3215_s12  ;;  %v3774_v50 = vld [vmem:[%s4069_s13] ss:$0 sm:$0xff] }
 0x634   :  { %v1001_v23 = vadd.f32 %v3733_v0, %v3774_v50  ;;  %v996_v26 = vadd.f32 %v3774_v50, %v3735_v53 }
 0x636   :  { %v1005_v24 = vmax.f32 %v1001_v23, 0.0 }
 0x64f   :  { %1289 = vadd.xlane.f32.xlu1 %v1288_v13 }
 0x652   :  { %1806 = vadd.xlane.f32.xlu0 %v1805_v27 }
 0x660   :  { %1684 = vrot.lane.b32.xlu1 %v3478_v52, %s3215_s12 }
 0x668   :  { %1304 = vrot.lane.b32.xlu0 %v3774_v50, %s3216_s0 }
 0x684   :  { %1803 = vadd.xlane.f32.xlu1 %v1802_v28 }
 0x695   :  { %1689 = vrot.lane.b32.xlu1 %v3774_v50, %s3215_s12 }
 0x69f   :  { %v1676_v52 = vpop.xlane.xlu1 %1675 }
 0x6a0   :  { %3166 = vrcp.f32 %v1676_v52 }
 0x6a2   :  { %v1679_v30 = vpop.xlane.xlu0 %1678 }
 0x6a3   :  { %v1302_v31 = vpop.permute.xlu1 %1301  ;;  %3168 = vrcp.f32 %v1679_v30 }
 0x6a4   :  { %3042 = vmatprep.subr.msk.mxu1 %vm4089_vm3, %v1302_v31 }
 0x6a5   :  { %3043 = vmatpush3.msk.msra.mxu1 %vm4089_vm3, %v1302_v31 }
 0x6a6   :  { %v1293_v21 = vpop.xlane.xlu0 %1292 }
 0x6a7   :  { %v1300_v57 = vpop.permute.xlu1 %1299  ;;  %3170 = vrcp.f32 %v1293_v21 }
 0x6a8   :  { %3044 = vmatprep.subr.mxu1 %v1300_v57 }
 0x6a9   :  { %3045 = vmatpush3.msra.mxu1 %v1300_v57 }
 0x6aa   :  { %v1687_v33 = vpop.permute.xlu0 %1686 }
 0x6ab   :  { %3065 = vmatprep.subr.msk.mxu0 %vm4089_vm3, %v1687_v33 }
 0x6ac   :  { %3066 = vmatpush3.msk.msra.mxu0 %vm4089_vm3, %v1687_v33 }
 0x6ad   :  { %v3167_v16 = vpop.eup %3166 }
 0x6ae   :  { %v1682_v34 = vmul.f32 %v3167_v16, %v3159_v9  ;;  %v2835_v16 = vld [vmem:[#allocation2] ss:$0 sm:$0xff] }
 0x6b0   :  { %3069 = vmatprep.mubr.msk.f32.mxu0 %vm712_vm0, %v1682_v34  ;;  %v3169_v37 = vpop.eup %3168 }
 0x6b1   :  { %v1683_v43 = vmul.f32 %v3169_v37, %v3161_v18 }
 0x6b4   :  { %v3171_v40 = vpop.eup %3170 }
 0x6b5   :  { %v1297_v47 = vmul.f32 %v3171_v40, %v3163_v10  ;;  %v2839_v40 = vld [vmem:[%s4105_s26] ss:$0 sm:$0xff] }
 0x6b6   :  { %vm2129_vm11 = vcmp.eq.s32.totalorder %v3368_v12, %v2839_v40 }
 0x6d8   :  { %v1290_v17 = vpop.xlane.xlu1 %1289 }
 0x6d9   :  { %3172 = vrcp.f32 %v1290_v17 }
 0x6db   :  { %v1807_v39 = vpop.xlane.xlu0 %1806 }
 0x6dc   :  { %3174 = vrsqrt.f32 %v1807_v39  ;;  %v1685_v42 = vpop.permute.xlu1 %1684 }
 0x6dd   :  { %3067 = vmatprep.subr.mxu0 %v1685_v42 }
 0x6de   :  { %3068 = vmatpush3.msra.mxu0 %v1685_v42  ;;  %v2002_v42 = vld [vmem:[%s4104_s9] sm:$0xff] }
 0x6df   :  { %3070 = vmatmul.mubr.msk.f32.vlgmr.msra.gmra.mxu0 %vm712_vm0, %v1683_v43  ;;  %v1305_v61 = vpop.permute.xlu0 %1304  ;;  %v2003_v43 = vld [vmem:[%s4104_s9 + $0x8] sm:$0xf] }
 0x6e6   :  { %v3173_v44 = vpop.eup %3172 }
 0x6e7   :  { %v1296_v38 = vmul.f32 %v3173_v44, %v3165_v35  ;;  %v3844_v44 = vsel %vm2129_vm11, 1.0, %v3211_v15 }
 0x6e9   :  { %v3175_v48 = vpop.eup %3174  ;;  %3046 = vmatprep.mubr.msk.f32.mxu1 %vm712_vm0, %v1296_v38  ;;  %v2139_v38 = vsel %vm4088_vm4, %v3844_v44, 0.0 }
 0x6ea   :  { %3047 = vmatmul.mubr.msk.f32.vlgmr.msra.gmra.mxu1 %vm712_vm0, %v1297_v47  ;;  %v1813_v36 = vmul.f32 %v3175_v48, %v3529_v29  ;;  %v1811_v9 = vmul.f32 %v3175_v48, %v3764_v41  ;;  %v2834_v41 = vld [vmem:[%s4070_s14] ss:$0 sm:$0xff] }
 0x6eb   :  { %3076 = vmatprep.mubr.msk.f32.mxu1 %vm712_vm0, %v3212_v22 }
 0x6ec   :  { %3072 = vmatprep.subr.msk.mxu1 %vm4089_vm3, %v1813_v36 }
 0x6ed   :  { %3073 = vmatpush3.msk.msra.mxu1 %vm4089_vm3, %v1813_v36 }
 0x70d   :  { %v1804_v59 = vpop.xlane.xlu1 %1803 }
 0x70e   :  { %3176 = vrsqrt.f32 %v1804_v59 }
 0x711   :  { %v1690_v56 = vpop.permute.xlu1 %1689 }
 0x71b   :  { %v3177_v49 = vpop.eup %3176 }
 0x71c   :  { %v1812_v51 = vmul.f32 %v3177_v49, %v3536_v32  ;;  %v1810_v46 = vmul.f32 %v3177_v49, %v3780_v11  ;;  %v1004_v11 = vmax.f32 %v996_v26, 0.0 }
 0x71e   :  { %3074 = vmatprep.subr.mxu1 %v1812_v51 }
 0x71f   :  { %3075 = vmatpush3.msra.mxu1 %v1812_v51 }
 0x720   :  { %3077 = vmatmul.mubr.msk.f32.vlgmr.msra.gmra.mxu1 %vm712_vm0, %v3212_v22 }
 0x721   :  { %3090 = vmatprep.mubr.msk.f32.mxu1 %vm712_vm0, %v3212_v22 }
 0x79f   :  { %v3071_v60 = vpop.f32.mrf.mxu0 }
 0x7a0   :  { %v1772_v62 = vadd.f32 %v3071_v60, %v1690_v56 }
 0x7a1   :  { %v1766_v63 = vpop.f32.mrf.mxu0 }
 0x7a2   :  { %v1776_v1 = vmax.f32 %v1772_v62, 0.0  ;;  %v1767_v2 = vadd.f32 %v1766_v63, %v1690_v56 }
 0x7a4   :  { %1789 = vrot.lane.b32.xlu1 %v1776_v1, %s3215_s12  ;;  %v1775_v3 = vmax.f32 %v1767_v2, 0.0 }
 0x7a8   :  { %1787 = vrot.lane.b32.xlu1 %v1775_v3, %s3215_s12 }
 0x7aa   :  { %v3048_v54 = vpop.f32.mrf.mxu1 }
 0x7ab   :  { %v1387_v25 = vadd.f32 %v3048_v54, %v1305_v61 }
 0x7ac   :  { %v1381_v6 = vpop.f32.mrf.mxu1 }
 0x7ad   :  { %v1391_v7 = vmax.f32 %v1387_v25, 0.0  ;;  %v1382_v4 = vadd.f32 %v1381_v6, %v1305_v61 }
 0x7af   :  { %1781 = vrot.lane.b32.xlu0 %v1391_v7, %s3214_s11  ;;  %v1390_v8 = vmax.f32 %v1382_v4, 0.0 }
 0x7b3   :  { %1779 = vrot.lane.b32.xlu0 %v1390_v8, %s3214_s11 }
 0x7e0   :  { %v3078_v19 = vpop.f32.mrf.mxu1 }
 0x7e1   :  { %v1893_v18 = vmul.f32 %v3078_v19, %v1811_v9 }
 0x7e2   :  { %v1883_v10 = vpop.f32.mrf.mxu1 }
 0x7e3   :  { %v1892_v58 = vmul.f32 %v1883_v10, %v1810_v46 }
 0x7e5   :  { %3083 = vmatprep.mubr.msk.f32.mxu0 %vm712_vm0, %v1892_v58 }
 0x816   :  { %v1790_v35 = vpop.permute.xlu1 %1789 }
 0x81a   :  { %v1788_v52 = vpop.permute.xlu1 %1787 }
 0x821   :  { %v1782_v13 = vpop.permute.xlu0 %1781 }
 0x822   :  { %v1794_v27 = vsel %vm4084_vm15, %v1005_v24, %v1782_v13 }
 0x823   :  { %v3820_v55 = vsel %vm4085_vm6, %v1794_v27, %v1790_v35 }
 0x824   :  { %v1902_v0 = vmul.f32 %v2834_v41, %v3820_v55 }
 0x825   :  { %v1780_v28 = vpop.permute.xlu0 %1779 }
 0x826   :  { %v1793_v53 = vsel %vm4084_vm15, %v1004_v11, %v1780_v28  ;;  %v1908_v50 = vsel %vm4087_vm8, %v1902_v0, 0.0 }
 0x827   :  { %1909 = vadd.xlane.f32.xlu0 %v1908_v50  ;;  %v3826_v30 = vsel %vm4085_vm6, %v1793_v53, %v1788_v52  ;;  %v2492_v53 = vld [vmem:[%s4072_s16 + $0x70] sm:$0xff]  ;;  %v2490_v50 = vld [vmem:[%s4072_s16 + $0x60] sm:$0xff] }
 0x828   :  { %v1901_v31 = vmul.f32 %v2834_v41, %v3826_v30 }
 0x82a   :  { %v1904_v21 = vsel %vm4086_vm9, %v1901_v31, 0.0  ;;  %v2488_v31 = vld [vmem:[%s4072_s16 + $0x50] sm:$0xff] }
 0x82b   :  { %1905 = vadd.xlane.f32.xlu1 %v1904_v21  ;;  %v2487_v21 = vld [vmem:[%s4072_s16 + $0x48] sm:$0xff] }
 0x8b0   :  { %v1910_v57 = vpop.xlane.xlu0 %1909 }
 0x8b1   :  { %3079 = vmatprep.subr.msk.mxu0 %vm4089_vm3, %v1910_v57 }
 0x8b2   :  { %3080 = vmatpush3.msk.msra.mxu0 %vm4089_vm3, %v1910_v57  ;;  %v2486_v57 = vld [vmem:[%s4072_s16 + $0x40] sm:$0xff] }
 0x8b4   :  { %v1906_v33 = vpop.xlane.xlu1 %1905 }
 0x8b5   :  { %3081 = vmatprep.subr.mxu0 %v1906_v33 }
 0x8b6   :  { %3082 = vmatpush3.msra.mxu0 %v1906_v33  ;;  %v2485_v33 = vld [vmem:[%s4072_s16 + $0x38] sm:$0xff] }
 0x8b7   :  { %3084 = vmatmul.mubr.msk.f32.vlgmr.msra.gmra.mxu0 %vm712_vm0, %v1893_v18 }
 0x977   :  { %v3085_v34 = vpop.f32.mrf.mxu0 }
 0x978   :  { %v1999_v17 = vadd.f32 %v3085_v34, %v2835_v16  ;;  %v2483_v34 = vld [vmem:[%s4072_s16 + $0x28] sm:$0xff] }
 0x979   :  { %v1993_v37 = vpop.f32.mrf.mxu0 }
 0x97a   :  { %v1994_v39 = vadd.f32 %v2835_v16, %v1993_v37  ;;  %2024 = vperm.xlu0 %3139, %v1999_v17   ;;  %3178 = vtanh.f32 %v1999_v17  ;;  %v2484_v16 = vld [vmem:[%s4072_s16 + $0x30] sm:$0xff]  ;;  %v2482_v17 = vld [vmem:[%s4072_s16 + $0x20] sm:$0xff]  ;;  %v2481_v37 = vld [vmem:[%s4072_s16 + $0x18] sm:$0xff] }
 0x97c   :  { %2019 = vperm.xlu1 %3140, %v1994_v39   ;;  %3180 = vtanh.f32 %v1994_v39  ;;  %v2480_v39 = vld [vmem:[%s4072_s16 + $0x10] sm:$0xff] }
 0x980   :  { %2006 = vperm.xlu1 %3140, %v2002_v42   ;;  %v2479_v42 = vld [vmem:[%s4072_s16 + $0x8] sm:$0xff] }
 0x984   :  { %2009 = vperm.xlu1 %3140, %v2003_v43   ;;  %v2478_v43 = vld [vmem:[%s4072_s16] sm:$0xff] }
 0x987   :  { %v3179_v19 = vpop.eup %3178 }
 0x989   :  { %v3181_v18 = vpop.eup %3180 }
 0x999   :  { %2140 = vadd.xlane.f32.xlu0 %v2139_v38  ;;  %v2499_v38 = vld [vmem:[%s4072_s16 + $0xa8] sm:$0xff] }
 0x9f5   :  { %v2025_v47 = vpop.permute.xlu0 %2024 }
 0x9f6   :  { %v2028_v48 = vmul.f32 %v3529_v29, %v2025_v47 }
 0x9f7   :  { %v2020_v36 = vpop.permute.xlu1 %2019 }
 0x9f8   :  { %v2027_v59 = vmul.f32 %v3536_v32, %v2020_v36  ;;  %3086 = vmatprep.subr.msk.mxu1 %vm4089_vm3, %v2028_v48 }
 0x9f9   :  { %3087 = vmatpush3.msk.msra.mxu1 %vm4089_vm3, %v2028_v48  ;;  %v2497_v48 = vld [vmem:[%s4072_s16 + $0x98] sm:$0xff] }
 0x9fa   :  { %3088 = vmatprep.subr.mxu1 %v2027_v59 }
 0x9fb   :  { %3089 = vmatpush3.msra.mxu1 %v2027_v59  ;;  %v2007_v49 = vpop.permute.xlu1 %2006  ;;  %v2495_v59 = vld [vmem:[%s4072_s16 + $0x88] sm:$0xff] }
 0x9fc   :  { %vm2132_vm14 = vcmp.eq.s32.totalorder %v3391_v20, %v2007_v49  ;;  %3091 = vmatmul.mubr.msk.f32.vlgmr.msra.gmra.mxu1 %vm712_vm0, %v3212_v22  ;;  %3098 = vmatprep.subr.mxu1 %v3211_v15  ;;  %vm2015_vm4 = vcmp.eq.s32.totalorder %v2007_v49, %v2839_v40 }
 0x9fd   :  { %v2846_v51 = vsel %vm2132_vm14, 1.0, %v3211_v15  ;;  %3102 = vmatprep.mubr.msk.f32.mxu1 %vm4090_vm12, %v3211_v15 }
 0x9fe   :  { %3095 = vmatprep.mubr.msk.f32.mxu0 %vm479_vm13, %v2846_v51 }
 0x9ff   :  { %v2010_v56 = vpop.permute.xlu1 %2009 }
 0xa00   :  { %vm2133_vm2 = vcmp.eq.s32.totalorder %v3391_v20, %v2010_v56  ;;  %vm2016_vm9 = vcmp.eq.s32.totalorder %v2010_v56, %v2839_v40  ;;  %v2501_v40 = vld [vmem:[%s4072_s16 + $0xb8] sm:$0xff] }
 0xa01   :  { %v2847_v1 = vsel %vm2133_vm2, 1.0, %v3211_v15  ;;  %v2585_v56 = vld [vmem:[%s4074_s18 + $0x18] sm:$0xff] }
 0xa22   :  { %v2141_v60 = vpop.xlane.xlu0 %2140 }
 0xa23   :  { %v2142_v62 = vmul.f32 0.5, %v2141_v60 }
 0xa25   :  { %v2143_v63 = vceil.f32 %v2142_v62 }
 0xa27   :  { %3093 = vmatprep.subr.msk.mxu0 %vm489_vm1, %v2143_v63 }
 0xa28   :  { %3094 = vmatpush3.msk.msra.mxu0 %vm489_vm1, %v2143_v63 }
 0xa29   :  { %3096 = vmatmul.mubr.msk.f32.vlgmr.msra.gmra.mxu0 %vm479_vm13, %v2847_v1  ;;  %3105 = vmatprep.subr.mxu0 %v3211_v15 }
 0xa2a   :  { %3109 = vmatprep.mubr.msk.f32.mxu0 %vm4090_vm12, %v3211_v15 }
 0xabc   :  { %v3092_v2 = vpop.f32.mrf.mxu1 }
 0xabd   :  { %vm2108_vm11 = vcmp.gt.f32.partialorder %v3092_v2, %v2025_v47  ;;  %vm2110_vm14 = vcmp.eq.f32.partialorder %v3092_v2, %v2025_v47  ;;  %v2498_v47 = vld [vmem:[%s4072_s16 + $0xa0] sm:$0xff] }
 0xabe   :  { %vm2114_vm15 = vmand %vm2110_vm14, %vm2112_vm5  ;;  %v2098_v3 = vpop.f32.mrf.mxu1  ;;  %vm4110_vm14 = vcmask 781312  }
 0xabf   :  { %vm2116_vm2 = vmor %vm2108_vm11, %vm2114_vm15  ;;  %vm2107_vm1 = vcmp.gt.f32.partialorder %v2098_v3, %v2020_v36  ;;  %vm2109_vm6 = vcmp.eq.f32.partialorder %v2098_v3, %v2020_v36  ;;  %v2496_v36 = vld [vmem:[%s4072_s16 + $0x90] sm:$0xff] }
 0xac0   :  { %vm2113_vm13 = vmand %vm2109_vm6, %vm2111_vm7 }
 0xac1   :  { %vm2115_vm8 = vmor %vm2107_vm1, %vm2113_vm13  ;;  %vm4112_vm1 = vcmask 785408  }
 0xac2   :  { %vm2118_vm3 = vmand %vm2016_vm9, %vm2116_vm2  ;;  %vm4109_vm9 = vmmov 0  }
 0xac3   :  { %v2844_v61 = vsel %vm2118_vm3, 1.0, %v3211_v15  ;;  %vm2117_vm12 = vmand %vm2015_vm4, %vm2115_vm8  ;;  %vm4108_vm8 = vcmask 91136  }
 0xac4   :  { %v2126_v14 = vsel %vm894_vm10, %v2844_v61, 0.0  ;;  %v2843_v54 = vsel %vm2117_vm12, 1.0, %v3211_v15  ;;  %vm4106_vm12 = vcmask 1043456   ;;  %vm4111_vm2 = vmmov %vm4110_vm14 }
 0xac5   :  { %2127 = vadd.xlane.f32.xlu1 %v2126_v14  ;;  %v2123_v20 = vsel %vm712_vm0, %v2843_v54, 0.0  ;;  %vm4107_vm6 = vmmov %vm4106_vm12 }
 0xac6   :  { %2124 = vadd.xlane.f32.xlu0 %v2123_v20  ;;  %vm4113_vm13 = vmmov %vm4112_vm1 }
 0xae9   :  { %v3097_v25 = vpop.f32.mrf.mxu0 }
 0xaeb   :  { %v2219_v7 = vpop.f32.mrf.mxu0 }
 0xb4e   :  { %v2128_v6 = vpop.xlane.xlu1 %2127 }
 0xb4f   :  { %vm2229_vm7 = vcmp.lt.f32.partialorder %v2128_v6, %v3097_v25  ;;  %v2125_v4 = vpop.xlane.xlu0 %2124 }
 0xb50   :  { %v2852_v8 = vsel %vm2229_vm7, 1.0, %v3211_v15  ;;  %vm2228_vm15 = vcmp.lt.f32.partialorder %v2125_v4, %v2219_v7  ;;  %vm2468_vm7 = vcmp.eq.s32.totalorder %v3368_v12, 1 }
 0xb51   :  { %v2851_v9 = vsel %vm2228_vm15, 1.0, %v3211_v15  ;;  %2241 = vperm.xlu0 %3139, %v2852_v8   ;;  %vm2444_vm15 = vcmp.eq.s32.totalorder %v3368_v12, 0  ;;  %v2583_v12 = vld [vmem:[%s4074_s18 + $0x8] sm:$0xff] }
 0xb52   :  { %2236 = vperm.xlu1 %3140, %v2851_v9  }
 0xb55   :  { %2328 = vperm.xlu0 %3139, %v3179_v19  }
 0xb59   :  { %2323 = vperm.xlu0 %3139, %v3181_v18  }
 0xbcc   :  { %v2242_v46 = vpop.permute.xlu0 %2241 }
 0xbcd   :  { %v2245_v10 = vmul.f32 %v3529_v29, %v2242_v46  ;;  %v2237_v58 = vpop.permute.xlu1 %2236  ;;  %v2339_v23 = vmul.f32 %v2847_v1, %v2242_v46 }
 0xbce   :  { %v2244_v24 = vmul.f32 %v3536_v32, %v2237_v58  ;;  %v2338_v26 = vmul.f32 %v2846_v51, %v2237_v58  ;;  %v2494_v51 = vld [vmem:[%s4072_s16 + $0x80] sm:$0xff] }
 0xbcf   :  { %3099 = vmatpush3.msk.msra.mxu1 %vm4106_vm12, %v2245_v10  ;;  %vm2422_vm10 = vcmp.gt.f32.partialorder %v2339_v23, 0.0  ;;  %vm4114_vm12 = vmmov %vm4112_vm1 }
 0xbd0   :  { %vm2421_vm3 = vcmp.gt.f32.partialorder %v2338_v26, 0.0  ;;  %3100 = vmatprep.subr.mxu1 %v3211_v15  ;;  %v2329_v35 = vpop.permute.xlu0 %2328  ;;  %v2424_v27 = vsel %vm2422_vm10, 1, %v3210_v5  ;;  %vm4116_vm10 = vcmask 261120  }
 0xbd1   :  { %v3883_v13 = vmul.f32 %v2329_v35, %v3820_v55  ;;  %3101 = vmatpush3.msra.mxu1 %v2244_v24  ;;  %v2423_v41 = vsel %vm2421_vm3, 1, %v3210_v5  ;;  %v2493_v5 = vld [vmem:[%s4072_s16 + $0x78] sm:$0xff]  ;;  %vm4115_vm3 = vcmask 523264  }
 0xbd2   :  { %3103 = vmatmul.mubr.msk.f32.vlgmr.msra.gmra.mxu1 %vm712_vm0, %v3212_v22  ;;  %2426 = vperm.xlu0 %3139, %v2423_v41   ;;  %v3217_v22 = vmov 1  }
 0xbd3   :  { %3106 = vmatpush3.msk.msra.mxu0 %vm4107_vm6, %v3883_v13  ;;  %2511 = vmatprep.subr.mxu1 %v3211_v15  ;;  %vm4117_vm6 = vcmask 130048  }
 0xbd4   :  { %v2324_v29 = vpop.permute.xlu0 %2323  ;;  %3107 = vmatprep.subr.mxu0 %v3211_v15  ;;  %2512 = vmatpush1.msra.mxu1 %v2493_v5 }
 0xbd5   :  { %v3893_v32 = vmul.f32 %v2324_v29, %v3826_v30  ;;  %2513 = vmatprep.subr.mxu1 %v3211_v15  ;;  %v2489_v30 = vld [vmem:[%s4072_s16 + $0x58] sm:$0xff] }
 0xbd6   :  { %2429 = vperm.xlu0 %3139, %v2424_v27   ;;  %2514 = vmatpush1.msra.mxu1 %v2492_v53  ;;  %v2584_v53 = vld [vmem:[%s4074_s18 + $0x10] sm:$0xff] }
 0xbd7   :  { %3108 = vmatpush3.msra.mxu0 %v3893_v32  ;;  %2515 = vmatprep.subr.mxu1 %v3211_v15 }
 0xbd8   :  { %3112 = vmatprep.subr.mxu0 %v3211_v15 }
 0xbda   :  { %3141 = vset.pattern.permute.xlu0 %v3217_v22 }
 0xbdb   :  { %2450 = vperm.xlu0 %3141, %v2423_v41  }
 0xbdf   :  { %2453 = vperm.xlu0 %3141, %v2424_v27   ;;  %v2858_v27 = vsel %vm2468_vm7, 1.0, %v3211_v15 }
 0xc4d   :  { %v2427_v2 = vpop.permute.xlu0 %2426 }
 0xc4e   :  { %vm2431_vm11 = vcmp.eq.s32.totalorder %v2427_v2, 1 }
 0xc4f   :  { %v2433_v7 = vsel %vm2431_vm11, %v3893_v32, -1e+30 }
 0xc50   :  { %v2435_v19 = vsel %vm4113_vm13, %v2433_v7, -inf }
 0xc51   :  { %v2430_v3 = vpop.permute.xlu0 %2429 }
 0xc52   :  { %vm2432_vm4 = vcmp.eq.s32.totalorder %v2430_v3, 1 }
 0xc53   :  { %v2434_v20 = vsel %vm2432_vm4, %v3883_v13, -1e+30 }
 0xc54   :  { %v2436_v4 = vsel %vm4111_vm2, %v2434_v20, -inf }
 0xc55   :  { %v2437_v18 = vmax.f32 %v2435_v19, %v2436_v4 }
 0xc56   :  { %v2451_v61 = vpop.permute.xlu0 %2450 }
 0xc57   :  { %vm2455_vm5 = vcmp.eq.s32.totalorder %v2451_v61, 1  ;;  %v2438_v10 = vrot.slane %v2437_v18, 4 }
 0xc58   :  { %v2457_v25 = vsel %vm2455_vm5, %v3893_v32, -1e+30 }
 0xc59   :  { %v2459_v8 = vsel %vm4112_vm1, %v2457_v25, -inf  ;;  %v2439_v23 = vmax.f32 %v2437_v18, %v2438_v10 }
 0xc5a   :  { %v2454_v14 = vpop.permute.xlu0 %2453 }
 0xc5b   :  { %v2440_v26 = vrot.slane %v2439_v23, 2 }
 0xc92   :  { %v2315_v55 = vpop.f32.mrf.mxu1 }
 0xc93   :  { %v2336_v11 = vrot.slane %v2315_v55, %v3466_v45  ;;  %v2491_v45 = vld [vmem:[%s4072_s16 + $0x68] sm:$0xff]  ;;  %v2857_v55 = vsel %vm2444_vm15, 1.0, %v3211_v15 }
 0xc94   :  { %v3104_v0 = vpop.f32.mrf.mxu1  ;;  %2516 = vmatpush1.msra.mxu1 %v2491_v45  ;;  %v2582_v45 = vld [vmem:[%s4074_s18] sm:$0xff] }
 0xc95   :  { %v2337_v28 = vmul.f32 %v3844_v44, %v2336_v11  ;;  %2517 = vmatprep.subr.mxu1 %v3211_v15  ;;  %v2500_v44 = vld [vmem:[%s4072_s16 + $0xb0] sm:$0xff] }
 0xc96   :  { %2518 = vmatpush1.msra.mxu1 %v2490_v50  ;;  %v2859_v50 = vld [vmem:[%s4073_s17] ss:$0 sm:$0xff] }
 0xc97   :  { %3110 = vmatmul.mubr.msk.f32.vlgmr.msra.gmra.mxu0 %vm712_vm0, %v2337_v28  ;;  %v2340_v52 = vsel %vm4108_vm8, %v2337_v28, 0.0  ;;  %2519 = vmatprep.subr.mxu1 %v3211_v15  ;;  %vm2456_vm0 = vcmp.eq.s32.totalorder %v2454_v14, 1  ;;  %vm2749_vm8 = vcmask 25600  }
 0xc98   :  { %2341 = vadd.xlane.f32.xlu1 %v2340_v52  ;;  %3120 = vmatprep.mubr.msk.f32.mxu0 %vm4109_vm9, %v3211_v15  ;;  %v2458_v54 = vsel %vm2456_vm0, %v3883_v13, -1e+30  ;;  %v2441_v13 = vmax.f32 %v2439_v23, %v2440_v26 }
 0xc99   :  { %2520 = vmatpush1.msra.mxu1 %v2489_v30  ;;  %3113 = vmatpush3.msra.mxu0 %v2585_v56  ;;  %v2460_v6 = vsel %vm4110_vm14, %v2458_v54, -inf }
 0xc9a   :  { %2521 = vmatprep.subr.mxu1 %v3211_v15  ;;  %3114 = vmatprep.subr.mxu0 %v3211_v15  ;;  %v2461_v9 = vmax.f32 %v2459_v8, %v2460_v6  ;;  %v2442_v29 = vrot.slane %v2441_v13, 1 }
 0xc9b   :  { %2522 = vmatpush1.msra.mxu1 %v2488_v31  ;;  %3115 = vmatpush3.msra.mxu0 %v2584_v53 }
 0xc9c   :  { %2523 = vmatprep.subr.mxu1 %v3211_v15  ;;  %v2462_v46 = vrot.slane %v2461_v9, 4  ;;  %v2443_v22 = vmax.f32 %v2441_v13, %v2442_v29  ;;  %3116 = vmatprep.subr.mxu0 %v3211_v15 }
 0xc9d   :  { %2524 = vmatpush1.msra.mxu1 %v2487_v21  ;;  %3117 = vmatpush3.msra.mxu0 %v2583_v12 }
 0xc9e   :  { %2525 = vmatprep.subr.mxu1 %v3211_v15  ;;  %v2463_v58 = vmax.f32 %v2461_v9, %v2462_v46  ;;  %v2447_v0 = vmul.f32 %v2857_v55, %v2443_v22  ;;  %3118 = vmatprep.subr.mxu0 %v3211_v15 }
 0xc9f   :  { %2526 = vmatpush1.msra.mxu1 %v2486_v57  ;;  %3119 = vmatpush3.msra.mxu0 %v2582_v45 }
 0xca0   :  { %2527 = vmatprep.subr.mxu1 %v3211_v15  ;;  %v2464_v24 = vrot.slane %v2463_v58, 2  ;;  %3123 = vmatprep.subr.mxu0 %v3211_v15 }
 0xca1   :  { %2528 = vmatpush1.msra.mxu1 %v2485_v33  ;;  %v2668_v33 = vld [vmem:[%s4076_s20 + $0x8] sm:$0xff] }
 0xca2   :  { %2529 = vmatprep.subr.mxu1 %v3211_v15  ;;  %v2465_v35 = vmax.f32 %v2463_v58, %v2464_v24 }
 0xca3   :  { %2530 = vmatpush1.msra.mxu1 %v2484_v16  ;;  %v2667_v16 = vld [vmem:[%s4076_s20] sm:$0xff] }
 0xca4   :  { %2531 = vmatprep.subr.mxu1 %v3211_v15  ;;  %v2466_v41 = vrot.slane %v2465_v35, 1 }
 0xca5   :  { %2532 = vmatpush1.msra.mxu1 %v2483_v34  ;;  %v2861_v34 = vld [vmem:[%s4075_s19] ss:$0 sm:$0xff]  ;;  %s3218_s19 = smov [#allocation3]  }
 0xca6   :  { %2533 = vmatprep.subr.mxu1 %v3211_v15  ;;  %v2467_v32 = vmax.f32 %v2465_v35, %v2466_v41  ;;  %s2769_s20 = sshll.u32 %s3218_s19, 4  ;;  %s2770_s20 = int_to_ptr.vmem [resolvable:$true] %s2769_s20 }
 0xca7   :  { %2534 = vmatpush1.msra.mxu1 %v2482_v17  ;;  %p3193_p1 = scmp.lt.s32.totalorder %s2770_s20, %s2770_s20 }
 0xca8   :  { %2535 = vmatprep.subr.mxu1 %v3211_v15  ;;  %v2471_v11 = vmul.f32 %v2858_v27, %v2467_v32 }
 0xca9   :  { %2536 = vmatpush1.msra.mxu1 %v2481_v37 }
 0xcaa   :  { %2537 = vmatprep.subr.mxu1 %v3211_v15  ;;  %v2472_v28 = vadd.f32 %v2471_v11, %v2447_v0 }
 0xcab   :  { %2538 = vmatpush1.msra.mxu1 %v2480_v39 }
 0xcac   :  { %2539 = vmatprep.subr.mxu1 %v3211_v15 }
 0xcad   :  { %2540 = vmatpush1.msra.mxu1 %v2479_v42 }
 0xcae   :  { %2541 = vmatprep.subr.mxu1 %v3211_v15 }
 0xcaf   :  { %2542 = vmatpush1.msra.mxu1 %v2478_v43  ;;  %v2863_v43 = vld [vmem:[%s4077_s21] ss:$0 sm:$0xff]  ;;  %s3188_s21 = scalar_lea.vmem %s2770_s20, 32 }
 0xcb0   :  { %2559 = vmatprep.subr.mxu1 %v3211_v15  ;;  %p3189_p0 = scmp.ne.s32.totalorder %s2770_s20, %s3188_s21  ;;  %p3194_p2 = scmp.lt.s32.totalorder %s3188_s21, %s3188_s21 }
 0xcb1   :  { %2560 = vmatpush2.msra.mxu1 %v2501_v40 }
 0xcb2   :  { %2561 = vmatprep.subr.mxu1 %v3211_v15  ;;  %p3195_p3 = por %p3194_p2, %p3193_p1 }
 0xcb3   :  { %2562 = vmatpush2.msra.mxu1 %v2500_v44 }
 0xcb4   :  { %2563 = vmatprep.subr.mxu1 %v3211_v15  ;;  %p3196_p4 = pnand %p3195_p3, %p3189_p0 }
 0xcb5   :  { %2564 = vmatpush2.msra.mxu1 %v2499_v38 }
 0xcb6   :  { %2565 = vmatprep.subr.mxu1 %v3211_v15 }
 0xcb7   :  { %2566 = vmatpush2.msra.mxu1 %v2498_v47 }
 0xcb8   :  { %2567 = vmatprep.subr.mxu1 %v3211_v15 }
 0xcb9   :  { %2568 = vmatpush2.msra.mxu1 %v2497_v48 }
 0xcba   :  { %2569 = vmatprep.subr.mxu1 %v3211_v15 }
 0xcbb   :  { %2570 = vmatpush2.msra.mxu1 %v2496_v36 }
 0xcbc   :  { %2571 = vmatprep.subr.mxu1 %v3211_v15 }
 0xcbd   :  { %2572 = vmatpush2.msra.mxu1 %v2495_v59 }
 0xcbe   :  { %2573 = vmatprep.subr.mxu1 %v3211_v15 }
 0xcbf   :  { %2574 = vmatpush2.msra.mxu1 %v2494_v51 }
 0xd21   :  { %v2342_v49 = vpop.xlane.xlu1 %2341 }
 0xd22   :  { %3182 = vrcp.f32 %v2342_v49 }
 0xd2f   :  { %v3183_v60 = vpop.eup %3182 }
 0xd57   :  { %v2415_v62 = vpop.f32.mrf.mxu0 }
 0xd58   :  { %v2420_v63 = vmul.f32 %v3183_v60, %v2415_v62 }
 0xd59   :  { %v3111_v1 = vpop.f32.mrf.mxu0 }
 0xd5a   :  { %2474 = vrot.lane.b32.xlu0 %v2420_v63, %s3216_s0 }
 0xdcc   :  { %v2475_v52 = vpop.permute.xlu0 %2474 }
 0xdcd   :  { %v2477_v5 = vsel %vm4114_vm12, %v2472_v28, %v2475_v52  ;;  %2860 = vmatprep.mubr.msk.f32.mxu1 %vm4115_vm3, %v2475_v52 }
 0xdce   :  { %2576 = vmatmul.mubr.f32.vlgmr.msra.gmra.mxu1 %v2477_v5 }
 0xe8e   :  { %v2577_v30 = vpop.f32.mrf.mxu1 }
 0xe8f   :  { %v2578_v31 = vadd.f32 %v2859_v50, %v2577_v30 }
 0xe90   :  { %v2579_v21 = vpop.f32.mrf.mxu1 }
 0xe91   :  { %v2581_v57 = vmax.f32 %v2578_v31, 0.0 }
 0xe93   :  { %3121 = vmatmul.mubr.msk.f32.vlgmr.msra.gmra.mxu0 %vm4116_vm10, %v2581_v57 }
 0xe94   :  { %3127 = vmatprep.mubr.msk.f32.mxu0 %vm4109_vm9, %v3211_v15  ;;  %3124 = vmatpush3.msra.mxu0 %v2668_v33 }
 0xe95   :  { %3125 = vmatprep.subr.mxu0 %v3211_v15 }
 0xe96   :  { %3126 = vmatpush3.msra.mxu0 %v2667_v16 }
 0xf53   :  { %v2662_v17 = vpop.f32.mrf.mxu0 }
 0xf54   :  { %v2663_v37 = vadd.f32 %v2861_v34, %v2662_v17 }
 0xf55   :  { %v3122_v39 = vpop.f32.mrf.mxu0 }
 0xf56   :  { %v2666_v42 = vmax.f32 %v2663_v37, 0.0 }
 0xf58   :  { %3128 = vmatmul.mubr.msk.f32.vlgmr.msra.gmra.mxu0 %vm4117_vm6, %v2666_v42 }
0x1018   :  { %v2745_v15 = vpop.f32.mrf.mxu0 }
0x1019   :  { %v2746_v40 = vadd.f32 %v2863_v43, %v2745_v15 }
0x101a   :  { %v3129_v44 = vpop.f32.mrf.mxu0 }
0x101b   :  { %v2750_v38 = vsel %vm2749_vm8, %v2746_v40, -inf }
0x101c   :  { %2751 = vmax.xlane.f32.xlu0 %v2750_v38 }
0x10a5   :  { %v2752_v47 = vpop.xlane.xlu0 %2751 }
0x10a6   :  { %v2753_v48 = vsub.f32 %v2746_v40, %v2752_v47 }
0x10a8   :  { %v2754_v36 = vmul.f32 1.442695, %v2753_v48 }
0x10aa   :  { %3184 = vpow2.f32 %v2754_v36 }
0x10b7   :  { %v3185_v59 = vpop.eup %3184 }
0x10b8   :  { %v2756_v49 = vsel %vm2749_vm8, %v3185_v59, 0.0 }
0x10b9   :  { %2757 = vadd.xlane.f32.xlu1 %v2756_v49 }
0x1142   :  { %v2758_v51 = vpop.xlane.xlu1 %2757 }
0x1143   :  { %3186 = vlog2.f32 %v2758_v51 }
0x1150   :  { %v3187_v56 = vpop.eup %3186 }
0x1151   :  { %v2760_v60 = vmul.f32 0.6931472, %v3187_v56 }
0x1153   :  { %v2761_v62 = vsub.f32 %v2753_v48, %v2760_v60 }
0x1155   :  { %2762 = vst.msk [vmem:[#allocation3] sm:$0x3] %vm2749_vm8, %v2761_v62 }
0x1156   :  { %3199 = shalt.err (!%p3196_p4)
}
0x1157   :  { %2772 = dma.vmem_to_hbm [thread:$0]  %s2770_s20, 32, %s4078_s22, [#allocation4]  }
0x1158   :  { %3208 = dma.done.wait [#allocation4], 32  }
0x1159   :  { %3209 = vsyncadd [#allocation4], 4294967264 }
0x115a   :  { %2776 = vsyncpa [#allocation4], 1 }

</bundles_post_ra>
